<compile_context>
chip_gen: v7x
topology: tpu7x:2x2x1
jax: 0.10.0
libtpu: 0.0.40
codegen_flags: <defaults>
</compile_context>

<pallas_src>
import functools

import jax
import jax.numpy as jnp
from jax.experimental import pallas as pl
from jax.experimental.pallas import tpu as pltpu

NEG_SLOPE = 0.01  # torch.nn.LeakyReLU default


def _leaky_relu(x):
    return jnp.where(x > 0, x, NEG_SLOPE * x)


def point_feat_kernel(x_ref, w1_ref, b1_ref, w2_ref, b2_ref, w3_ref, b3_ref,
                      o_ref, acc_ref, *, chunk):
    """Grid = (split, batch, n_tile); n_tile is the reduction ('arbitrary') axis.

    Channels-major throughout: activations are (Cout, points) so the point axis
    stays on lanes, matching the un-transposed (B, 6, N) input layout.
    """
    n = pl.program_id(2)
    tn = x_ref.shape[2]

    @pl.when(n == 0)
    def _init():
        acc_ref[...] = jnp.full(acc_ref.shape, -jnp.inf, acc_ref.dtype)

    x = x_ref[0].astype(jnp.bfloat16)                               # (6, tn)

    # Conv1d(6, 64, k=1) + LeakyReLU: (64, 6) @ (6, tn), f32 accumulate.
    h = jnp.dot(w1_ref[...], x, preferred_element_type=jnp.float32)  # (64, tn)
    h = _leaky_relu(h + b1_ref[...])

    # Conv1d(64, 128, k=1) + LeakyReLU: bf16 MXU, f32 accumulate.
    h = jnp.dot(w2_ref[...], h.astype(jnp.bfloat16),
                preferred_element_type=jnp.float32)                  # (128, tn)
    h = _leaky_relu(h + b2_ref[...]).astype(jnp.bfloat16)

    # Conv1d(128, feat, k=1) + running max, chunked over the point (lane) axis
    # so the live (feat, chunk) f32 slab is bounded independently of tn.
    # conv3 bias is hoisted past the max (added at finalize).
    acc = acc_ref[...]                                               # (feat, 128)
    for c in range(tn // chunk):
        hc = jnp.dot(w3_ref[...], h[:, c * chunk:(c + 1) * chunk],
                     preferred_element_type=jnp.float32)             # (feat, chunk)
        m = hc[:, 0:128]
        for j in range(1, chunk // 128):           # VPU maxes over free, 128-
            m = jnp.maximum(m, hc[:, j * 128:(j + 1) * 128])  # aligned lane slices
        acc = jnp.maximum(acc, m)
    acc_ref[...] = acc

    @pl.when(n == pl.num_programs(2) - 1)
    def _finalize():
        pooled = jnp.max(acc_ref[...], axis=1, keepdims=True)        # (feat, 1)
        o_ref[...] = (pooled + b3_ref[...])[None, None]              # (1,1,feat,1)


def _round_up(x, m):
    return ((x + m - 1) // m) * m


def _tensorcores_per_chip():
    """2 TensorCores on v4/v5p (megacore) and v7x; 1 on v2/v3/v5e/v6e."""
    try:
        kind = jax.devices()[0].device_kind.lower()
    except Exception:
        return 1
    if "lite" in kind or "v5e" in kind or "v6e" in kind:
        return 1
    if any(tag in kind for tag in ("v4", "v5p", "v7", "7x")):
        return 2
    return 1


def _vmem_cap_bytes():
    """Scoped-VMEM ceiling: ~56 MiB on 64-MiB parts (v7x), ~100 MiB on 128-MiB parts."""
    phys = None
    try:
        phys = pltpu.get_tpu_info().vmem_capacity_bytes
    except Exception:
        phys = None
    if not phys:
        phys = 64 * 1024 * 1024   # conservative (v7x-sized) fallback
    return min(100 * 1024 * 1024, phys - 8 * 1024 * 1024)


def point_feat_cnn(x_ncw, params, *, tile_n=8192, n_splits=None):
    """x_ncw: (B, 6, N) float32. Returns torch-style squeezed (B, 1024) features.

    tile_n:   point-axis tile (rounded to a multiple of 128).  8192 amortizes the
              ~0.35us grid-step cost; the in-kernel conv3 chunking keeps VMEM
              bounded, so the same default works on v5e/v6e (128 MiB) and v7x (64 MiB).
    n_splits: parallel split of the point axis.  Defaults to 2 only on 2-core
              chips (v4/v5p/v7x) when B == 1 (otherwise the batch axis already
              feeds both cores).  Partial maxima are combined by a tiny jnp.max.
    """
    w1, b1, w2, b2, w3, b3 = params      # torch layout: w (cout, cin), b (cout,)
    B, C, N = x_ncw.shape
    assert C == 6
    feat = w3.shape[0]

    # Point-axis tile: lane dim, multiple of 128.
    tn = min(_round_up(tile_n, 128), _round_up(N, 128))
    n_tiles = pl.cdiv(N, tn)

    if n_splits is None:
        n_splits = 2 if (_tensorcores_per_chip() >= 2 and B == 1 and n_tiles >= 2) else 1
    n_splits = max(1, min(int(n_splits), n_tiles))
    n_tiles = _round_up(n_tiles, n_splits)
    tiles_per_split = n_tiles // n_splits
    n_pad = n_tiles * tn

    # In-kernel conv3 chunk: largest lane-aligned divisor of tn up to 1024 points.
    chunk = 128
    for cand in (1024, 512, 256, 128):
        if tn % cand == 0:
            chunk = cand
            break

    # Edge-pad the point axis (repeat last point): max-neutral, so no in-kernel
    # -inf masking is needed (even for tiles that are entirely padding).
    if n_pad != N:
        x_ncw = jnp.pad(x_ncw, ((0, 0), (0, 0), (0, n_pad - N)), mode="edge")

    # bf16 weights for the MXU (f32 accumulation in-kernel); biases stay f32 as
    # (cout, 1) columns so they broadcast over the lane (point) axis.
    w1_bf = w1.astype(jnp.bfloat16)
    w2_bf = w2.astype(jnp.bfloat16)
    w3_bf = w3.astype(jnp.bfloat16)
    b1c, b2c, b3c = b1[:, None], b2[:, None], b3[:, None]

    # Generation-aware scoped-VMEM limit.  Only the BlockSpec-managed x tile and
    # weights are double-buffered; the in-kernel intermediates are single copies.
    x_block = 8 * tn * 4                                        # (1, 6->8, tn) f32
    w_bytes = (64 * 128 + 128 * 128 + feat * 128) * 2 \
        + (64 + 128 + feat) * 128 * 4                           # lane-padded w + b
    acc_bytes = feat * 128 * 4
    inter = tn * (32 + 32 + 256 + 128 + 512 + 256) \
        + 2 * chunk * feat * 4 + feat * 128 * 8                 # x/h1/h2 + 2 conv3 chunks
    need = 2 * x_block + 2 * w_bytes + acc_bytes + inter + (8 << 20)
    vmem_limit = int(min(_vmem_cap_bytes(), max(32 << 20, need)))

    grid = (n_splits, B, tiles_per_split)
    kernel = functools.partial(point_feat_kernel, chunk=chunk)

    partial_max = pl.pallas_call(
        kernel,
        out_shape=jax.ShapeDtypeStruct((n_splits, B, feat, 1), jnp.float32),
        grid=grid,
        in_specs=[
            pl.BlockSpec((1, C, tn),
                         lambda s, b, n: (b, 0, s * tiles_per_split + n)),
            pl.BlockSpec((64, C), lambda s, b, n: (0, 0)),
            pl.BlockSpec((64, 1), lambda s, b, n: (0, 0)),
            pl.BlockSpec((128, 64), lambda s, b, n: (0, 0)),
            pl.BlockSpec((128, 1), lambda s, b, n: (0, 0)),
            pl.BlockSpec((feat, 128), lambda s, b, n: (0, 0)),
            pl.BlockSpec((feat, 1), lambda s, b, n: (0, 0)),
        ],
        out_specs=pl.BlockSpec((1, 1, feat, 1), lambda s, b, n: (s, b, 0, 0)),
        scratch_shapes=[pltpu.VMEM((feat, 128), jnp.float32)],
        compiler_params=pltpu.CompilerParams(
            dimension_semantics=("parallel", "parallel", "arbitrary"),
            vmem_limit_bytes=vmem_limit),
    )(x_ncw, w1_bf, b1c, w2_bf, b2c, w3_bf, b3c)

    out = jnp.max(partial_max, axis=0)       # combine splits: (B, feat, 1)
    # torch's x.squeeze(): (B,1024,1) -> (B,1024); for B==1 -> (1024,)
    return jnp.squeeze(out)


def init_params(key, feature_dim=1024):
    """PyTorch Conv1d default init (uniform +-1/sqrt(fan_in)); weights kept in
    torch layout (cout, cin), which is exactly the channels-major layout the
    kernel wants.

    NOTE: in the batch_norm=False branch the last conv is hard-coded to 1024
    output channels; feature_dim only matters in the batch_norm=True branch.
    """
    del feature_dim
    dims = [(6, 64), (64, 128), (128, 1024)]
    params = []
    for i, (cin, cout) in enumerate(dims):
        kw, kb = jax.random.split(jax.random.fold_in(key, i))
        bound = 1.0 / float(cin) ** 0.5
        w = jax.random.uniform(kw, (cout, cin), jnp.float32, -bound, bound)
        b = jax.random.uniform(kb, (cout,), jnp.float32, -bound, bound)
        params.extend([w, b])
    return tuple(params)


def reference_forward(x_ncw, params):
    """Pure-JAX f32 reference of the PyTorch forward for verification."""
    w1, b1, w2, b2, w3, b3 = params
    h = jnp.einsum('oc,bcn->bon', w1, x_ncw) + b1[None, :, None]
    h = _leaky_relu(h)
    h = jnp.einsum('oc,bcn->bon', w2, h) + b2[None, :, None]
    h = _leaky_relu(h)
    h = jnp.einsum('oc,bcn->bon', w3, h) + b3[None, :, None]
    h = jnp.max(h, axis=-1, keepdims=True)   # AdaptiveMaxPool1d(1)
    return jnp.squeeze(h)


if __name__ == "__main__":
    key = jax.random.PRNGKey(0)
    k1, k2, k3, kp = jax.random.split(key, 4)
    params = init_params(kp)

    # Test 1: batch=2, tiny cloud -> single point tile, no split.
    x1 = jax.random.normal(k1, (2, 6, 64), jnp.float32)
    out1 = jax.block_until_ready(point_feat_cnn(x1, params))
    ref1 = reference_forward(x1, params)
    assert out1.shape == (2, 1024), out1.shape
    assert jnp.allclose(out1, ref1, atol=3e-2, rtol=3e-2), "mismatch vs reference (test 1)"

    # Test 2: B=1, ragged N, multiple tiles + explicit 2-way point-axis split.
    x2 = jax.random.normal(k2, (1, 6, 200), jnp.float32)
    out2 = jax.block_until_ready(point_feat_cnn(x2, params, tile_n=128, n_splits=2))
    ref2 = reference_forward(x2, params)
    assert out2.shape == (1024,), out2.shape
    assert jnp.allclose(out2, ref2, atol=3e-2, rtol=3e-2), "mismatch vs reference (test 2)"

    # Test 3: exercises the in-kernel conv3 chunking path (tn > chunk), defaults.
    x3 = jax.random.normal(k3, (1, 6, 2500), jnp.float32)
    out3 = jax.block_until_ready(point_feat_cnn(x3, params))
    ref3 = reference_forward(x3, params)
    assert out3.shape == (1024,), out3.shape
    assert jnp.allclose(out3, ref3, atol=3e-2, rtol=3e-2), "mismatch vs reference (test 3)"

    print("KERNEL_OK")
</pallas_src>

<mosaic_0001>
module attributes {stable_mosaic.version = 11 : i64} {
  func.func @point_feat_kernel(%arg0: i32, %arg1: i32, %arg2: i32, %arg3: memref<1x6x128xf32, #tpu.memory_space<vmem>>, %arg4: memref<64x6xbf16, #tpu.memory_space<vmem>>, %arg5: memref<64x1xf32, #tpu.memory_space<vmem>>, %arg6: memref<128x64xbf16, #tpu.memory_space<vmem>>, %arg7: memref<128x1xf32, #tpu.memory_space<vmem>>, %arg8: memref<1024x128xbf16, #tpu.memory_space<vmem>>, %arg9: memref<1024x1xf32, #tpu.memory_space<vmem>>, %arg10: memref<1x1x1024x1xf32, #tpu.memory_space<vmem>>, %arg11: memref<1024x128xf32, #tpu.memory_space<vmem>>) attributes {dimension_semantics = [#tpu.dimension_semantics<parallel>, #tpu.dimension_semantics<parallel>, #tpu.dimension_semantics<arbitrary>], iteration_bounds = array<i64: 1, 2, 1>, scalar_prefetch = 0 : i64, scratch_operands = 1 : i64, tpu.core_type = #tpu.core_type<tc>, window_params = [{transform_indices = @transform_0, window_bounds = array<i64: 1, 6, 128>}, {pipeline_mode = #tpu.pipeline_mode<synchronous>, transform_indices = @transform_1, window_bounds = array<i64: 64, 6>}, {pipeline_mode = #tpu.pipeline_mode<synchronous>, transform_indices = @transform_2, window_bounds = array<i64: 64, 1>}, {pipeline_mode = #tpu.pipeline_mode<synchronous>, transform_indices = @transform_3, window_bounds = array<i64: 128, 64>}, {pipeline_mode = #tpu.pipeline_mode<synchronous>, transform_indices = @transform_4, window_bounds = array<i64: 128, 1>}, {pipeline_mode = #tpu.pipeline_mode<synchronous>, transform_indices = @transform_5, window_bounds = array<i64: 1024, 128>}, {pipeline_mode = #tpu.pipeline_mode<synchronous>, transform_indices = @transform_6, window_bounds = array<i64: 1024, 1>}, {transform_indices = @transform_7, window_bounds = array<i64: 1, 1, 1024, 1>}]} {
    %c0_i32 = arith.constant 0 : i32
    %0 = arith.cmpi eq, %arg2, %c0_i32 : i32
    %1 = arith.extui %0 : i1 to i32
    %c0_i32_0 = arith.constant 0 : i32
    %2 = arith.cmpi ne, %1, %c0_i32_0 : i32
    scf.if %2 {
      %cst_25 = arith.constant 0xFF800000 : f32
      %36 = vector.broadcast %cst_25 : f32 to vector<1024x128xf32>
      %c0_26 = arith.constant 0 : index
      %c0_27 = arith.constant 0 : index
      %37 = vector.load %arg11[%c0_26, %c0_27] : memref<1024x128xf32, #tpu.memory_space<vmem>>, vector<1024x128xf32>
      tpu.vector_store %arg11[%c0_26, %c0_27], %36 {strides = array<i32>} : memref<1024x128xf32, #tpu.memory_space<vmem>>, vector<1024x128xf32>,
    } else {
    }
    %c0 = arith.constant 0 : index
    %c0_1 = arith.constant 0 : index
    %c0_2 = arith.constant 0 : index
    %3 = vector.load %arg3[%c0, %c0_1, %c0_2] : memref<1x6x128xf32, #tpu.memory_space<vmem>>, vector<1x6x128xf32>
    %4 = vector.shape_cast %3 : vector<1x6x128xf32> to vector<6x128xf32>
    %5 = arith.truncf %4 : vector<6x128xf32> to vector<6x128xbf16>
    %c0_3 = arith.constant 0 : index
    %c0_4 = arith.constant 0 : index
    %6 = vector.load %arg4[%c0_3, %c0_4] : memref<64x6xbf16, #tpu.memory_space<vmem>>, vector<64x6xbf16>
    %cst = arith.constant dense<0.000000e+00> : vector<64x128xf32>
    %7 = tpu.matmul %6, %5, %cst {dimension_numbers = #tpu.dot_dimension_numbers<[1], [0], [0], [1], [0, 0, 1, 1], [], []>} : vector<64x6xbf16>, vector<6x128xbf16>, vector<64x128xf32> -> vector<64x128xf32>
    %c0_5 = arith.constant 0 : index
    %c0_6 = arith.constant 0 : index
    %8 = vector.load %arg5[%c0_5, %c0_6] : memref<64x1xf32, #tpu.memory_space<vmem>>, vector<64x1xf32>
    %9 = vector.broadcast %8 : vector<64x1xf32> to vector<64x128xf32>
    %10 = arith.addf %7, %9 : vector<64x128xf32>
    %cst_7 = arith.constant 0.000000e+00 : f32
    %11 = vector.broadcast %cst_7 : f32 to vector<64x128xf32>
    %12 = arith.cmpf ogt, %10, %11 : vector<64x128xf32>
    %cst_8 = arith.constant 0.00999999977 : f32
    %13 = vector.broadcast %cst_8 : f32 to vector<64x128xf32>
    %14 = arith.mulf %13, %10 : vector<64x128xf32>
    %15 = arith.select %12, %10, %14 : vector<64x128xi1>, vector<64x128xf32>
    %c0_9 = arith.constant 0 : index
    %c0_10 = arith.constant 0 : index
    %16 = vector.load %arg6[%c0_9, %c0_10] : memref<128x64xbf16, #tpu.memory_space<vmem>>, vector<128x64xbf16>
    %17 = arith.truncf %15 : vector<64x128xf32> to vector<64x128xbf16>
    %cst_11 = arith.constant dense<0.000000e+00> : vector<128x128xf32>
    %18 = tpu.matmul %16, %17, %cst_11 {dimension_numbers = #tpu.dot_dimension_numbers<[1], [0], [0], [1], [0, 0, 1, 1], [], []>} : vector<128x64xbf16>, vector<64x128xbf16>, vector<128x128xf32> -> vector<128x128xf32>
    %c0_12 = arith.constant 0 : index
    %c0_13 = arith.constant 0 : index
    %19 = vector.load %arg7[%c0_12, %c0_13] : memref<128x1xf32, #tpu.memory_space<vmem>>, vector<128x1xf32>
    %20 = vector.broadcast %19 : vector<128x1xf32> to vector<128x128xf32>
    %21 = arith.addf %18, %20 : vector<128x128xf32>
    %cst_14 = arith.constant 0.000000e+00 : f32
    %22 = vector.broadcast %cst_14 : f32 to vector<128x128xf32>
    %23 = arith.cmpf ogt, %21, %22 : vector<128x128xf32>
    %cst_15 = arith.constant 0.00999999977 : f32
    %24 = vector.broadcast %cst_15 : f32 to vector<128x128xf32>
    %25 = arith.mulf %24, %21 : vector<128x128xf32>
    %26 = arith.select %23, %21, %25 : vector<128x128xi1>, vector<128x128xf32>
    %27 = arith.truncf %26 : vector<128x128xf32> to vector<128x128xbf16>
    %c0_16 = arith.constant 0 : index
    %c0_17 = arith.constant 0 : index
    %28 = vector.load %arg11[%c0_16, %c0_17] : memref<1024x128xf32, #tpu.memory_space<vmem>>, vector<1024x128xf32>
    %c0_18 = arith.constant 0 : index
    %c0_19 = arith.constant 0 : index
    %29 = vector.load %arg8[%c0_18, %c0_19] : memref<1024x128xbf16, #tpu.memory_space<vmem>>, vector<1024x128xbf16>
    %cst_20 = arith.constant dense<0.000000e+00> : vector<1024x128xf32>
    %30 = tpu.matmul %29, %27, %cst_20 {dimension_numbers = #tpu.dot_dimension_numbers<[1], [0], [0], [1], [0, 0, 1, 1], [], []>} : vector<1024x128xbf16>, vector<128x128xbf16>, vector<1024x128xf32> -> vector<1024x128xf32>
    %31 = arith.maximumf %28, %30 : vector<1024x128xf32>
    %c0_21 = arith.constant 0 : index
    %c0_22 = arith.constant 0 : index
    %32 = vector.load %arg11[%c0_21, %c0_22] : memref<1024x128xf32, #tpu.memory_space<vmem>>, vector<1024x128xf32>
    tpu.vector_store %arg11[%c0_21, %c0_22], %31 {strides = array<i32>} : memref<1024x128xf32, #tpu.memory_space<vmem>>, vector<1024x128xf32>,
    %c0_i32_23 = arith.constant 0 : i32
    %33 = arith.cmpi eq, %arg2, %c0_i32_23 : i32
    %34 = arith.extui %33 : i1 to i32
    %c0_i32_24 = arith.constant 0 : i32
    %35 = arith.cmpi ne, %34, %c0_i32_24 : i32
    scf.if %35 {
      %c0_25 = arith.constant 0 : index
      %c0_26 = arith.constant 0 : index
      %36 = vector.load %arg11[%c0_25, %c0_26] : memref<1024x128xf32, #tpu.memory_space<vmem>>, vector<1024x128xf32>
      %cst_27 = arith.constant dense<0xFF800000> : vector<1024xf32>
      %37 = vector.multi_reduction <maximumf>, %36, %cst_27 [1] : vector<1024x128xf32> to vector<1024xf32>
      %38 = vector.shape_cast %37 : vector<1024xf32> to vector<1024x1xf32>
      %c0_28 = arith.constant 0 : index
      %c0_29 = arith.constant 0 : index
      %39 = vector.load %arg9[%c0_28, %c0_29] : memref<1024x1xf32, #tpu.memory_space<vmem>>, vector<1024x1xf32>
      %40 = arith.addf %38, %39 : vector<1024x1xf32>
      %41 = vector.shape_cast %40 : vector<1024x1xf32> to vector<1x1x1024x1xf32>
      %c0_30 = arith.constant 0 : index
      %c0_31 = arith.constant 0 : index
      %c0_32 = arith.constant 0 : index
      %c0_33 = arith.constant 0 : index
      %42 = vector.load %arg10[%c0_30, %c0_31, %c0_32, %c0_33] : memref<1x1x1024x1xf32, #tpu.memory_space<vmem>>, vector<1x1x1024x1xf32>
      tpu.vector_store %arg10[%c0_30, %c0_31, %c0_32, %c0_33], %41 {strides = array<i32>} : memref<1x1x1024x1xf32, #tpu.memory_space<vmem>>, vector<1x1x1024x1xf32>,
    } else {
    }
    return
  }
  func.func @transform_0(%arg0: i32, %arg1: i32, %arg2: i32) -> (i32, i32, i32) {
    %c1_i32 = arith.constant 1 : i32
    %0 = arith.muli %arg0, %c1_i32 : i32
    %1 = arith.addi %0, %arg2 : i32
    %c0_i32 = arith.constant 0 : i32
    %c0_i32_0 = arith.constant 0 : i32
    return %arg1, %c0_i32, %1 : i32, i32, i32
  }
  func.func @transform_1(%arg0: i32, %arg1: i32, %arg2: i32) -> (i32, i32) {
    %c0_i32 = arith.constant 0 : i32
    %c0_i32_0 = arith.constant 0 : i32
    %c0_i32_1 = arith.constant 0 : i32
    return %c0_i32, %c0_i32_0 : i32, i32
  }
  func.func @transform_2(%arg0: i32, %arg1: i32, %arg2: i32) -> (i32, i32) {
    %c0_i32 = arith.constant 0 : i32
    %c0_i32_0 = arith.constant 0 : i32
    %c0_i32_1 = arith.constant 0 : i32
    return %c0_i32, %c0_i32_0 : i32, i32
  }
  func.func @transform_3(%arg0: i32, %arg1: i32, %arg2: i32) -> (i32, i32) {
    %c0_i32 = arith.constant 0 : i32
    %c0_i32_0 = arith.constant 0 : i32
    %c0_i32_1 = arith.constant 0 : i32
    return %c0_i32, %c0_i32_0 : i32, i32
  }
  func.func @transform_4(%arg0: i32, %arg1: i32, %arg2: i32) -> (i32, i32) {
    %c0_i32 = arith.constant 0 : i32
    %c0_i32_0 = arith.constant 0 : i32
    %c0_i32_1 = arith.constant 0 : i32
    return %c0_i32, %c0_i32_0 : i32, i32
  }
  func.func @transform_5(%arg0: i32, %arg1: i32, %arg2: i32) -> (i32, i32) {
    %c0_i32 = arith.constant 0 : i32
    %c0_i32_0 = arith.constant 0 : i32
    %c0_i32_1 = arith.constant 0 : i32
    return %c0_i32, %c0_i32_0 : i32, i32
  }
  func.func @transform_6(%arg0: i32, %arg1: i32, %arg2: i32) -> (i32, i32) {
    %c0_i32 = arith.constant 0 : i32
    %c0_i32_0 = arith.constant 0 : i32
    %c0_i32_1 = arith.constant 0 : i32
    return %c0_i32, %c0_i32_0 : i32, i32
  }
  func.func @transform_7(%arg0: i32, %arg1: i32, %arg2: i32) -> (i32, i32, i32, i32) {
    %c0_i32 = arith.constant 0 : i32
    %c0_i32_0 = arith.constant 0 : i32
    %c0_i32_1 = arith.constant 0 : i32
    return %arg0, %arg1, %c0_i32, %c0_i32_0 : i32, i32, i32, i32
  }
}

</mosaic_0001>

<bundles_post_ra>
// kernel: tpu_custom_call.1
= control target key start
LH: loop header
LB: loop body
LE: loop exit
PB: predicated region body
PF: predicated region fallthrough
CT: control target
= control target key end

     0   :  { %s3827_s24 = smov 0   ;;  %s3829_s25 = smov 0   ;;  %s5079_s0 = inlined_call_operand.vmem [shape: f32[2,6,128], index: 0, kind: input, shape index: {}]   ;;  %s5080_s1 = inlined_call_operand.vmem [shape: bf16[64,6], index: 1, kind: input, shape index: {}]   ;;  %s5081_s2 = inlined_call_operand.vmem [shape: f32[64,1], index: 2, kind: input, shape index: {}]   ;;  %s5082_s3 = inlined_call_operand.vmem [shape: bf16[128,64], index: 3, kind: input, shape index: {}]   ;;  %s5083_s4 = inlined_call_operand.vmem [shape: f32[128,1], index: 4, kind: input, shape index: {}]   ;;  %s5084_s5 = inlined_call_operand.vmem [shape: bf16[1024,128], index: 5, kind: input, shape index: {}]   ;;  %s5085_s6 = inlined_call_operand.vmem [shape: f32[1024,1], index: 6, kind: input, shape index: {}]   ;;  %s5086_s7 = inlined_call_operand.vmem [shape: f32[1,2,1024,1], index: 7, kind: output, shape index: {}]  }
   0x1   :  { %s3831_s26 = smov 0  }
   0x2 LB: > { %s32_s27 = sadd.s32 1, %s3780_s25  ;;  %p3280_p0 = scmp.ge.s32.totalorder %s3784_s26, 1  ;;  %s3784_s26 = sphi %s3831_s26, %s17_s26   ;;  %s3780_s25 = sphi %s3829_s25, %s5092_s25   ;;  %s3776_s24 = sphi %s3827_s24, %s5091_s24  }
   0x3   : > { %p34_p1 = scmp.ge.s32.totalorder %s32_s27, 2  ;;  %p266_p2 = scmp.lt.s32.totalorder %s3784_s26, 3 }
   0x5   : > { %s5094_s27 = smov (%p34_p1, %s32_s27), 0  ;;  %p267_p3 = pnand %p3280_p0, %p266_p2 }
   0x7   : > { %270 = sbr.rel (%p267_p3) target bundleno = 1131 (0x46b), region = 48 }
   0xe   : > { %p306_p4 = scmp.lt.s32.totalorder %s3776_s24, 1  ;;  %v3686_v0 = vld [vmem:[%s5080_s1] sm:$0xff]   ;;  %vm534_vm0 = vcmask 48128   ;;  %v3786_v1 = vmov 0   ;;  %v468_v3 = vld [vmem:[%s5081_s2 + $0x10] sm:$0xff]  ;;  %vm547_vm1 = vcmask 1042432  }
   0xf   : > { %3466 = vmatprep.mubr.msk.bf16.mxu0 %vm534_vm0, %v3686_v0  ;;  %3684 = vset.pattern.permute.xlu0 %v3786_v1  ;;  %v466_v2 = vld [vmem:[%s5081_s2] sm:$0xff]  ;;  %v467_v5 = vld [vmem:[%s5081_s2 + $0x8] sm:$0xff]  ;;  %v469_v7 = vld [vmem:[%s5081_s2 + $0x18] sm:$0xff]  ;;  %vm796_vm2 = vcmask 523264  }
  0x10   : > { %s5096_s24 = smov (!%p306_p4, %s3776_s24), 1  ;;  %3685 = vset.pattern.permute.xlu1 %v3786_v1  ;;  %476 = vperm.xlu0 %3684, %v466_v2   ;;  %v3687_v9 = vld [vmem:[%s5080_s1 + $0x8] sm:$0xff]   ;;  %v3688_v10 = vld [vmem:[%s5080_s1 + $0x10] sm:$0xff]   ;;  %v470_v11 = vld [vmem:[%s5081_s2 + $0x20] sm:$0xff] }
  0x11   : > { %s3281_s30 = sshll.u32 %s5096_s24, 3  ;;  %486 = vperm.xlu1 %3685, %v468_v3   ;;  %v471_v12 = vld [vmem:[%s5081_s2 + $0x28] sm:$0xff]  ;;  %v472_v13 = vld [vmem:[%s5081_s2 + $0x30] sm:$0xff]  ;;  %v473_v14 = vld [vmem:[%s5081_s2 + $0x38] sm:$0xff]  ;;  %s3374_s19 = sshll.u32 %s5096_s24, 10 }
  0x12   : > { %s312_s14 = scalar_lea.vmem %s5079_s0, %s3281_s30  ;;  %v3689_v15 = vld [vmem:[%s5080_s1 + $0x18] sm:$0xff]   ;;  %v660_v16 = vld [vmem:[%s5083_s4] sm:$0xff]  ;;  %v661_v17 = vld [vmem:[%s5083_s4 + $0x8] sm:$0xff]  ;;  %s4378_s30 = scalar_lea.vmem %s5086_s7, %s3374_s19 }
  0x13   : > { %v456_v4 = vld [vmem:[%s312_s14] sm:$0x3f]  ;;  %v662_v18 = vld [vmem:[%s5083_s4 + $0x10] sm:$0xff]  ;;  %v663_v19 = vld [vmem:[%s5083_s4 + $0x18] sm:$0xff] }
  0x14   : > { %v457_v6 = vpack.c.bf16 %v456_v4, %v456_v4  ;;  %481 = vperm.xlu0 %3684, %v467_v5   ;;  %v664_v20 = vld [vmem:[%s5083_s4 + $0x20] sm:$0xff]  ;;  %v665_v21 = vld [vmem:[%s5083_s4 + $0x28] sm:$0xff]  ;;  %v666_v22 = vld [vmem:[%s5083_s4 + $0x30] sm:$0xff] }
  0x15   : > { %491 = vperm.xlu1 %3685, %v469_v7   ;;  %v667_v23 = vld [vmem:[%s5083_s4 + $0x38] sm:$0xff]  ;;  %v668_v24 = vld [vmem:[%s5083_s4 + $0x40] sm:$0xff]  ;;  %v669_v25 = vld [vmem:[%s5083_s4 + $0x48] sm:$0xff] }
  0x16   : > { %3658 = vmatprep.subr.msk.bf16.mxu0 %vm547_vm1, %v457_v6  ;;  %v549_v8 = vsel %vm547_vm1, %v457_v6, 0  ;;  %v670_v26 = vld [vmem:[%s5083_s4 + $0x50] sm:$0xff]  ;;  %v671_v27 = vld [vmem:[%s5083_s4 + $0x58] sm:$0xff]  ;;  %v672_v28 = vld [vmem:[%s5083_s4 + $0x60] sm:$0xff] }
  0x17   : > { %3465 = vmatpush3.bf16.msra.mxu0 %v549_v8  ;;  %v673_v29 = vld [vmem:[%s5083_s4 + $0x68] sm:$0xff]  ;;  %v674_v30 = vld [vmem:[%s5083_s4 + $0x70] sm:$0xff]  ;;  %v675_v31 = vld [vmem:[%s5083_s4 + $0x78] sm:$0xff] }
  0x18   : > { %496 = vperm.xlu0 %3684, %v470_v11   ;;  %v3690_v32 = vld [vmem:[%s5082_s3] sm:$0xff]  }
  0x19   : > { %501 = vperm.xlu1 %3685, %v471_v12   ;;  %3482 = vmatprep.mubr.msk.bf16.mxu1 %vm796_vm2, %v3690_v32 }
  0x1a   : > { %3467 = vmatmul.mubr.msk.bf16.vlgmr.msra.gmra.mrb[0].mxu0 %vm534_vm0, %v3687_v9 }
  0x1b   : > { %3470 = vmatprep.mubr.msk.bf16.mxu0 %vm534_vm0, %v3688_v10 }
  0x1c   : > { %506 = vperm.xlu0 %3684, %v472_v13   ;;  %v3691_v13 = vld [vmem:[%s5082_s3 + $0x8] sm:$0xff]  }
  0x1d   : > { %511 = vperm.xlu1 %3685, %v473_v14   ;;  %v3692_v14 = vld [vmem:[%s5082_s3 + $0x10] sm:$0xff]  }
  0x20   : > { %678 = vperm.xlu0 %3684, %v660_v16   ;;  %v3694_v16 = vld [vmem:[%s5082_s3 + $0x20] sm:$0xff]  }
  0x21   : > { %683 = vperm.xlu1 %3685, %v661_v17   ;;  %v3695_v17 = vld [vmem:[%s5082_s3 + $0x28] sm:$0xff]  }
  0x22   : > { %3471 = vmatmul.mubr.msk.bf16.gmra.mrb[4].mxu0 %vm534_vm0, %v3689_v15  ;;  %v3693_v15 = vld [vmem:[%s5082_s3 + $0x18] sm:$0xff]  }
  0x24   : > { %688 = vperm.xlu0 %3684, %v662_v18   ;;  %v3696_v18 = vld [vmem:[%s5082_s3 + $0x30] sm:$0xff]  }
  0x25   : > { %693 = vperm.xlu1 %3685, %v663_v19   ;;  %v3697_v19 = vld [vmem:[%s5082_s3 + $0x38] sm:$0xff]  }
  0x28   : > { %698 = vperm.xlu0 %3684, %v664_v20   ;;  %v3698_v20 = vld [vmem:[%s5084_s5] sm:$0xff]  }
  0x29   : > { %703 = vperm.xlu1 %3685, %v665_v21   ;;  %v3699_v21 = vld [vmem:[%s5084_s5 + $0x110] sm:$0xff]   ;;  %3514 = vmatprep.mubr.bf16.mxu0 %v3698_v20 }
  0x2c   : > { %708 = vperm.xlu0 %3684, %v666_v22  }
  0x2d   : > { %713 = vperm.xlu1 %3685, %v667_v23  }
  0x30   : > { %718 = vperm.xlu0 %3684, %v668_v24  }
  0x31   : > { %723 = vperm.xlu1 %3685, %v669_v25  }
  0x34   : > { %728 = vperm.xlu0 %3684, %v670_v26  }
  0x35   : > { %733 = vperm.xlu1 %3685, %v671_v27  }
  0x38   : > { %738 = vperm.xlu0 %3684, %v672_v28  }
  0x39   : > { %743 = vperm.xlu1 %3685, %v673_v29  }
  0x3c   : > { %748 = vperm.xlu0 %3684, %v674_v30  }
  0x3d   : > { %753 = vperm.xlu1 %3685, %v675_v31  }
  0x8f   : > { %v477_v33 = vpop.permute.xlu0 %476 }
  0x90   : > { %v487_v34 = vpop.permute.xlu1 %486 }
  0x93   : > { %v482_v35 = vpop.permute.xlu0 %481 }
  0x94   : > { %v492_v36 = vpop.permute.xlu1 %491 }
  0x97   : > { %v497_v40 = vpop.permute.xlu0 %496 }
  0x98   : > { %v502_v46 = vpop.permute.xlu1 %501 }
  0x9b   : > { %v507_v53 = vpop.permute.xlu0 %506 }
  0x9c   : > { %v512_v61 = vpop.permute.xlu1 %511 }
  0x9f   : > { %v679_v22 = vpop.permute.xlu0 %678 }
  0xa0   : > { %v684_v23 = vpop.permute.xlu1 %683 }
  0xa3   : > { %v689_v24 = vpop.permute.xlu0 %688 }
  0xa4   : > { %v694_v25 = vpop.permute.xlu1 %693 }
  0xa7   : > { %v699_v26 = vpop.permute.xlu0 %698 }
  0xa8   : > { %v704_v27 = vpop.permute.xlu1 %703 }
  0xab   : > { %v709_v28 = vpop.permute.xlu0 %708 }
  0xac   : > { %v714_v32 = vpop.permute.xlu1 %713 }
  0xed   : > { %v3468_v37 = vpop.f32.mrb[0].mxu0 }
  0xee   : > { %v594_v38 = vadd.f32 %v3468_v37, %v487_v34  ;;  %v585_v39 = vpop.f32.mrb[1].mxu0 }
  0xef   : > { %v586_v41 = vadd.f32 %v585_v39, %v477_v33  ;;  %v3469_v42 = vpop.f32.mrb[2].mxu0 }
  0xf0   : > { %v626_v43 = vmul.f32 0.01, %v594_v38  ;;  %v597_v44 = vadd.f32 %v3469_v42, %v492_v36  ;;  %v588_v45 = vpop.f32.mrb[3].mxu0  ;;  %vm618_vm3 = vcmp.gt.f32.partialorder %v594_v38, 0.0 }
  0xf1   : > { %v624_v47 = vmul.f32 0.01, %v586_v41  ;;  %v589_v48 = vadd.f32 %v588_v45, %v482_v35  ;;  %vm616_vm5 = vcmp.gt.f32.partialorder %v586_v41, 0.0  ;;  %v724_v45 = vpop.permute.xlu1 %723 }
  0xf2   : > { %vm619_vm4 = vcmp.gt.f32.partialorder %v597_v44, 0.0  ;;  %v627_v49 = vmul.f32 0.01, %v597_v44  ;;  %v634_v51 = vsel %vm618_vm3, %v594_v38, %v626_v43 }
  0xf3   : > { %v625_v50 = vmul.f32 0.01, %v589_v48  ;;  %vm617_vm6 = vcmp.gt.f32.partialorder %v589_v48, 0.0  ;;  %v632_v55 = vsel %vm616_vm5, %v586_v41, %v624_v47  ;;  %v719_v41 = vpop.permute.xlu0 %718 }
  0xf4   : > { %v635_v52 = vsel %vm619_vm4, %v597_v44, %v627_v49 }
  0xf5   : > { %v3472_v54 = vpop.f32.mrb[4].mxu0  ;;  %v633_v56 = vsel %vm617_vm6, %v589_v48, %v625_v50  ;;  %v657_v57 = vpack.c.bf16 %v635_v52, %v634_v51 }
  0xf6   : > { %v610_v58 = vadd.f32 %v3472_v54, %v507_v53  ;;  %v601_v59 = vpop.f32.mrb[5].mxu0  ;;  %v656_v60 = vpack.c.bf16 %v633_v56, %v632_v55 }
  0xf7   : > { %v602_v62 = vadd.f32 %v601_v59, %v497_v40  ;;  %v3473_v63 = vpop.f32.mrb[6].mxu0 }
  0xf8   : > { %v630_v0 = vmul.f32 0.01, %v610_v58  ;;  %v613_v1 = vadd.f32 %v3473_v63, %v512_v61  ;;  %v604_v2 = vpop.f32.mrb[7].mxu0  ;;  %3474 = vmatprep.subr.bf16.mxu1 %v656_v60  ;;  %vm622_vm7 = vcmp.gt.f32.partialorder %v610_v58, 0.0 }
  0xf9   : > { %v628_v3 = vmul.f32 0.01, %v602_v62  ;;  %v605_v4 = vadd.f32 %v604_v2, %v502_v46  ;;  %3475 = vmatpush3.bf16.msra.mxu1 %v656_v60  ;;  %vm620_vm8 = vcmp.gt.f32.partialorder %v602_v62, 0.0 }
  0xfa   : > { %vm623_vm9 = vcmp.gt.f32.partialorder %v613_v1, 0.0  ;;  %v631_v5 = vmul.f32 0.01, %v613_v1  ;;  %3476 = vmatprep.subr.bf16.mxu1 %v657_v57  ;;  %v638_v7 = vsel %vm622_vm7, %v610_v58, %v630_v0  ;;  %v729_v58 = vpop.permute.xlu0 %728 }
  0xfb   : > { %vm621_vm10 = vcmp.gt.f32.partialorder %v605_v4, 0.0  ;;  %v629_v6 = vmul.f32 0.01, %v605_v4  ;;  %v636_v9 = vsel %vm620_vm8, %v602_v62, %v628_v3  ;;  %v734_v62 = vpop.permute.xlu1 %733 }
  0xfc   : > { %v639_v8 = vsel %vm623_vm9, %v613_v1, %v631_v5 }
  0xfd   : > { %3477 = vmatpush3.bf16.msra.mxu1 %v657_v57  ;;  %v637_v10 = vsel %vm621_vm10, %v605_v4, %v629_v6  ;;  %v659_v11 = vpack.c.bf16 %v639_v8, %v638_v7 }
  0xfe   : > { %v658_v12 = vpack.c.bf16 %v637_v10, %v636_v9  ;;  %v739_v9 = vpop.permute.xlu0 %738 }
 0x100   : > { %3478 = vmatprep.subr.bf16.mxu1 %v658_v12 }
 0x101   : > { %3479 = vmatpush3.bf16.msra.mxu1 %v658_v12 }
 0x102   : > { %3480 = vmatprep.subr.bf16.mxu1 %v659_v11 }
 0x105   : > { %3481 = vmatpush3.bf16.msra.mxu1 %v659_v11 }
 0x108   : > { %3483 = vmatmul.mubr.msk.bf16.vlgmr.msra.gmra.mrb[0].mxu1 %vm796_vm2, %v3691_v13 }
 0x109   : > { %3486 = vmatprep.mubr.msk.bf16.mxu1 %vm796_vm2, %v3692_v14 }
 0x110   : > { %3487 = vmatmul.mubr.msk.bf16.gmra.mrb[4].mxu1 %vm796_vm2, %v3693_v15  ;;  %v744_v15 = vpop.permute.xlu1 %743 }
 0x111   : > { %3490 = vmatprep.mubr.msk.bf16.mxu1 %vm796_vm2, %v3694_v16 }
 0x118   : > { %3491 = vmatmul.mubr.msk.bf16.gmra.mrb[8].mxu1 %vm796_vm2, %v3695_v17 }
 0x119   : > { %3494 = vmatprep.mubr.msk.bf16.mxu1 %vm796_vm2, %v3696_v18 }
 0x120   : > { %3495 = vmatmul.mubr.msk.bf16.gmra.mrb[12].mxu1 %vm796_vm2, %v3697_v19 }
 0x121   : > { %3582 = vmatprep.mubr.bf16.mxu1 %v3699_v21 }
 0x1db   : > { %v3484_v29 = vpop.f32.mrb[0].mxu1 }
 0x1dc   : > { %v864_v30 = vadd.f32 %v3484_v29, %v689_v24  ;;  %v855_v31 = vpop.f32.mrb[1].mxu1 }
 0x1dd   : > { %v856_v33 = vadd.f32 %v855_v31, %v679_v22  ;;  %v3485_v34 = vpop.f32.mrb[2].mxu1  ;;  %v749_v22 = vpop.permute.xlu0 %748 }
 0x1de   : > { %v936_v35 = vmul.f32 0.01, %v864_v30  ;;  %v867_v36 = vadd.f32 %v3485_v34, %v694_v25  ;;  %v858_v37 = vpop.f32.mrb[3].mxu1  ;;  %vm920_vm11 = vcmp.gt.f32.partialorder %v864_v30, 0.0 }
 0x1df   : > { %v934_v38 = vmul.f32 0.01, %v856_v33  ;;  %v859_v39 = vadd.f32 %v858_v37, %v684_v23  ;;  %vm918_vm12 = vcmp.gt.f32.partialorder %v856_v33, 0.0 }
 0x1e0   : > { %vm921_vm13 = vcmp.gt.f32.partialorder %v867_v36, 0.0  ;;  %v937_v40 = vmul.f32 0.01, %v867_v36  ;;  %v952_v43 = vsel %vm920_vm11, %v864_v30, %v936_v35  ;;  %v754_v30 = vpop.permute.xlu1 %753  ;;  %vm3058_vm11 = vcmask 7168  }
 0x1e1   : > { %vm919_vm14 = vcmp.gt.f32.partialorder %v859_v39, 0.0  ;;  %v935_v42 = vmul.f32 0.01, %v859_v39  ;;  %v950_v46 = vsel %vm918_vm12, %v856_v33, %v934_v38 }
 0x1e2   : > { %v953_v44 = vsel %vm921_vm13, %v867_v36, %v937_v40 }
 0x1e3   : > { %v967_v47 = vpack.c.bf16 %v953_v44, %v952_v43  ;;  %v951_v48 = vsel %vm919_vm14, %v859_v39, %v935_v42  ;;  %v3488_v49 = vpop.f32.mrb[4].mxu1 }
 0x1e4   : > { %v966_v50 = vpack.c.bf16 %v951_v48, %v950_v46  ;;  %v880_v51 = vadd.f32 %v3488_v49, %v709_v28  ;;  %v871_v52 = vpop.f32.mrb[5].mxu1  ;;  %v3700_v46 = vld [vmem:[%s5084_s5 + $0x8] sm:$0xff]   ;;  %v3702_v48 = vld [vmem:[%s5084_s5 + $0x10] sm:$0xff]   ;;  %v3704_v49 = vld [vmem:[%s5084_s5 + $0x120] sm:$0xff]  }
 0x1e5   : > { %v872_v53 = vadd.f32 %v871_v52, %v699_v26  ;;  %v3489_v54 = vpop.f32.mrb[6].mxu1  ;;  %v3706_v52 = vld [vmem:[%s5084_s5 + $0x20] sm:$0xff]  }
 0x1e6   : > { %v940_v55 = vmul.f32 0.01, %v880_v51  ;;  %v883_v56 = vadd.f32 %v3489_v54, %v714_v32  ;;  %v874_v57 = vpop.f32.mrb[7].mxu1  ;;  %3498 = vmatprep.subr.bf16.mxu0 %v966_v50  ;;  %3642 = vmatprep.subr.bf16.mxu1 %v966_v50  ;;  %vm924_vm15 = vcmp.gt.f32.partialorder %v880_v51, 0.0  ;;  %v3707_v54 = vld [vmem:[%s5084_s5 + $0x28] sm:$0xff]  }
 0x1e7   : > { %v938_v59 = vmul.f32 0.01, %v872_v53  ;;  %v875_v60 = vadd.f32 %v874_v57, %v704_v27  ;;  %3499 = vmatpush3.bf16.msra.mxu0 %v966_v50  ;;  %3650 = vmatpush3.bf16.msra.mxu1 %v966_v50  ;;  %vm922_vm0 = vcmp.gt.f32.partialorder %v872_v53, 0.0  ;;  %v3703_v50 = vld [vmem:[%s5084_s5 + $0x18] sm:$0xff]   ;;  %v3712_v57 = vld [vmem:[%s5084_s5 + $0x140] sm:$0xff]  }
 0x1e8   : > { %vm925_vm1 = vcmp.gt.f32.partialorder %v883_v56, 0.0  ;;  %v941_v61 = vmul.f32 0.01, %v883_v56  ;;  %3500 = vmatprep.subr.bf16.mxu0 %v967_v47  ;;  %3643 = vmatprep.subr.bf16.mxu1 %v967_v47  ;;  %v956_v0 = vsel %vm924_vm15, %v880_v51, %v940_v55  ;;  %v3705_v51 = vld [vmem:[%s5084_s5 + $0x128] sm:$0xff]   ;;  %v3709_v55 = vld [vmem:[%s5084_s5 + $0x138] sm:$0xff]  }
 0x1e9   : > { %vm923_vm2 = vcmp.gt.f32.partialorder %v875_v60, 0.0  ;;  %v939_v63 = vmul.f32 0.01, %v875_v60  ;;  %v954_v2 = vsel %vm922_vm0, %v872_v53, %v938_v59  ;;  %v3708_v53 = vld [vmem:[%s5084_s5 + $0x130] sm:$0xff]   ;;  %v3713_v59 = vld [vmem:[%s5084_s5 + $0x148] sm:$0xff]  }
 0x1ea   : > { %v957_v1 = vsel %vm925_vm1, %v883_v56, %v941_v61  ;;  %v3710_v56 = vld [vmem:[%s5084_s5 + $0x30] sm:$0xff]  }
 0x1eb   : > { %v969_v3 = vpack.c.bf16 %v957_v1, %v956_v0  ;;  %v955_v4 = vsel %vm923_vm2, %v875_v60, %v939_v63  ;;  %v3492_v5 = vpop.f32.mrb[8].mxu1  ;;  %3501 = vmatpush3.bf16.msra.mxu0 %v967_v47  ;;  %3651 = vmatpush3.bf16.msra.mxu1 %v967_v47  ;;  %v3701_v47 = vld [vmem:[%s5084_s5 + $0x118] sm:$0xff]   ;;  %v3714_v60 = vld [vmem:[%s5084_s5 + $0x40] sm:$0xff]   ;;  %v3716_v61 = vld [vmem:[%s5084_s5 + $0x150] sm:$0xff]  }
 0x1ec   : > { %v968_v6 = vpack.c.bf16 %v955_v4, %v954_v2  ;;  %v896_v7 = vadd.f32 %v3492_v5, %v729_v58  ;;  %v887_v8 = vpop.f32.mrb[9].mxu1  ;;  %v3711_v58 = vld [vmem:[%s5084_s5 + $0x38] sm:$0xff]   ;;  %v3718_v0 = vld [vmem:[%s5084_s5 + $0x50] sm:$0xff]   ;;  %v3720_v1 = vld [vmem:[%s5084_s5 + $0x160] sm:$0xff]  }
 0x1ed   : > { %v888_v10 = vadd.f32 %v887_v8, %v719_v41  ;;  %v3493_v11 = vpop.f32.mrb[10].mxu1  ;;  %v3717_v63 = vld [vmem:[%s5084_s5 + $0x158] sm:$0xff]   ;;  %v3722_v4 = vld [vmem:[%s5084_s5 + $0x60] sm:$0xff]   ;;  %v3724_v5 = vld [vmem:[%s5084_s5 + $0x170] sm:$0xff]  }
 0x1ee   : > { %v944_v12 = vmul.f32 0.01, %v896_v7  ;;  %v899_v13 = vadd.f32 %v3493_v11, %v734_v62  ;;  %v890_v14 = vpop.f32.mrb[11].mxu1  ;;  %3502 = vmatprep.subr.bf16.mxu0 %v968_v6  ;;  %3644 = vmatprep.subr.bf16.mxu1 %v968_v6  ;;  %vm928_vm3 = vcmp.gt.f32.partialorder %v896_v7, 0.0  ;;  %v3715_v62 = vld [vmem:[%s5084_s5 + $0x48] sm:$0xff]   ;;  %v3719_v2 = vld [vmem:[%s5084_s5 + $0x58] sm:$0xff]  }
 0x1ef   : > { %v942_v16 = vmul.f32 0.01, %v888_v10  ;;  %v891_v17 = vadd.f32 %v890_v14, %v724_v45  ;;  %3503 = vmatpush3.bf16.msra.mxu0 %v968_v6  ;;  %3652 = vmatpush3.bf16.msra.mxu1 %v968_v6  ;;  %vm926_vm4 = vcmp.gt.f32.partialorder %v888_v10, 0.0  ;;  %v3723_v6 = vld [vmem:[%s5084_s5 + $0x68] sm:$0xff]   ;;  %v3726_v8 = vld [vmem:[%s5084_s5 + $0x70] sm:$0xff]  }
 0x1f0   : > { %vm929_vm5 = vcmp.gt.f32.partialorder %v899_v13, 0.0  ;;  %v945_v18 = vmul.f32 0.01, %v899_v13  ;;  %3504 = vmatprep.subr.bf16.mxu0 %v969_v3  ;;  %3645 = vmatprep.subr.bf16.mxu1 %v969_v3  ;;  %v960_v20 = vsel %vm928_vm3, %v896_v7, %v944_v12  ;;  %v3725_v7 = vld [vmem:[%s5084_s5 + $0x178] sm:$0xff]   ;;  %v3729_v11 = vld [vmem:[%s5084_s5 + $0x188] sm:$0xff]   ;;  %v3730_v12 = vld [vmem:[%s5084_s5 + $0x80] sm:$0xff]  }
 0x1f1   : > { %vm927_vm6 = vcmp.gt.f32.partialorder %v891_v17, 0.0  ;;  %v943_v19 = vmul.f32 0.01, %v891_v17  ;;  %v958_v23 = vsel %vm926_vm4, %v888_v10, %v942_v16  ;;  %v3727_v10 = vld [vmem:[%s5084_s5 + $0x78] sm:$0xff]   ;;  %v3731_v14 = vld [vmem:[%s5084_s5 + $0x88] sm:$0xff]   ;;  %v3734_v16 = vld [vmem:[%s5084_s5 + $0x90] sm:$0xff]  }
 0x1f2   : > { %v961_v21 = vsel %vm929_vm5, %v899_v13, %v945_v18  ;;  %v3732_v13 = vld [vmem:[%s5084_s5 + $0x190] sm:$0xff]   ;;  %v3735_v18 = vld [vmem:[%s5084_s5 + $0x98] sm:$0xff]  }
 0x1f3   : > { %v971_v24 = vpack.c.bf16 %v961_v21, %v960_v20  ;;  %v959_v25 = vsel %vm927_vm6, %v891_v17, %v943_v19  ;;  %v3496_v26 = vpop.f32.mrb[12].mxu1  ;;  %3505 = vmatpush3.bf16.msra.mxu0 %v969_v3  ;;  %3653 = vmatpush3.bf16.msra.mxu1 %v969_v3  ;;  %v3721_v3 = vld [vmem:[%s5084_s5 + $0x168] sm:$0xff]   ;;  %v3736_v17 = vld [vmem:[%s5084_s5 + $0x1a0] sm:$0xff]   ;;  %v3740_v21 = vld [vmem:[%s5084_s5 + $0x1b0] sm:$0xff]  }
 0x1f4   : > { %v970_v27 = vpack.c.bf16 %v959_v25, %v958_v23  ;;  %v912_v28 = vadd.f32 %v3496_v26, %v749_v22  ;;  %v903_v29 = vpop.f32.mrb[13].mxu1  ;;  %v3737_v19 = vld [vmem:[%s5084_s5 + $0x1a8] sm:$0xff]   ;;  %v3738_v20 = vld [vmem:[%s5084_s5 + $0xa0] sm:$0xff]   ;;  %v3741_v23 = vld [vmem:[%s5084_s5 + $0x1b8] sm:$0xff]  }
 0x1f5   : > { %v904_v31 = vadd.f32 %v903_v29, %v739_v9  ;;  %v3497_v32 = vpop.f32.mrb[14].mxu1  ;;  %v3728_v9 = vld [vmem:[%s5084_s5 + $0x180] sm:$0xff]   ;;  %v3739_v22 = vld [vmem:[%s5084_s5 + $0xa8] sm:$0xff]   ;;  %v3743_v26 = vld [vmem:[%s5084_s5 + $0xb8] sm:$0xff]  }
 0x1f6   : > { %v948_v33 = vmul.f32 0.01, %v912_v28  ;;  %v915_v34 = vadd.f32 %v3497_v32, %v754_v30  ;;  %v906_v35 = vpop.f32.mrb[15].mxu1  ;;  %3506 = vmatprep.subr.bf16.mxu0 %v970_v27  ;;  %3646 = vmatprep.subr.bf16.mxu1 %v970_v27  ;;  %vm932_vm7 = vcmp.gt.f32.partialorder %v912_v28, 0.0  ;;  %v3744_v25 = vld [vmem:[%s5084_s5 + $0x1c0] sm:$0xff]   ;;  %v3748_v29 = vld [vmem:[%s5084_s5 + $0x1d0] sm:$0xff]  }
 0x1f7   : > { %v946_v36 = vmul.f32 0.01, %v904_v31  ;;  %v907_v37 = vadd.f32 %v906_v35, %v744_v15  ;;  %3507 = vmatpush3.bf16.msra.mxu0 %v970_v27  ;;  %3654 = vmatpush3.bf16.msra.mxu1 %v970_v27  ;;  %vm930_vm8 = vcmp.gt.f32.partialorder %v904_v31, 0.0  ;;  %v3733_v15 = vld [vmem:[%s5084_s5 + $0x198] sm:$0xff]   ;;  %v3745_v27 = vld [vmem:[%s5084_s5 + $0x1c8] sm:$0xff]   ;;  %v3750_v32 = vld [vmem:[%s5084_s5 + $0xd0] sm:$0xff]  }
 0x1f8   : > { %vm933_vm9 = vcmp.gt.f32.partialorder %v915_v34, 0.0  ;;  %v949_v38 = vmul.f32 0.01, %v915_v34  ;;  %3508 = vmatprep.subr.bf16.mxu0 %v971_v24  ;;  %3647 = vmatprep.subr.bf16.mxu1 %v971_v24  ;;  %v964_v40 = vsel %vm932_vm7, %v912_v28, %v948_v33  ;;  %v3746_v28 = vld [vmem:[%s5084_s5 + $0xc0] sm:$0xff]   ;;  %v3747_v30 = vld [vmem:[%s5084_s5 + $0xc8] sm:$0xff]  }
 0x1f9   : > { %vm931_vm10 = vcmp.gt.f32.partialorder %v907_v37, 0.0  ;;  %v947_v39 = vmul.f32 0.01, %v907_v37  ;;  %v962_v42 = vsel %vm930_vm8, %v904_v31, %v946_v36  ;;  %v3749_v31 = vld [vmem:[%s5084_s5 + $0x1d8] sm:$0xff]   ;;  %v3752_v33 = vld [vmem:[%s5084_s5 + $0x1e0] sm:$0xff]   ;;  %v3753_v35 = vld [vmem:[%s5084_s5 + $0x1e8] sm:$0xff]  }
 0x1fa   : > { %v965_v41 = vsel %vm933_vm9, %v915_v34, %v949_v38  ;;  %v3751_v34 = vld [vmem:[%s5084_s5 + $0xd8] sm:$0xff]   ;;  %v3754_v36 = vld [vmem:[%s5084_s5 + $0xe0] sm:$0xff]   ;;  %v3755_v38 = vld [vmem:[%s5084_s5 + $0xe8] sm:$0xff]  }
 0x1fb   : > { %v973_v43 = vpack.c.bf16 %v965_v41, %v964_v40  ;;  %v963_v44 = vsel %vm931_vm10, %v907_v37, %v947_v39  ;;  %3509 = vmatpush3.bf16.msra.mxu0 %v971_v24  ;;  %3655 = vmatpush3.bf16.msra.mxu1 %v971_v24  ;;  %v3742_v24 = vld [vmem:[%s5084_s5 + $0xb0] sm:$0xff]   ;;  %v3757_v39 = vld [vmem:[%s5084_s5 + $0x1f8] sm:$0xff]  }
 0x1fc   : > { %v972_v45 = vpack.c.bf16 %v963_v44, %v962_v42  ;;  %v3756_v37 = vld [vmem:[%s5084_s5 + $0x1f0] sm:$0xff]   ;;  %v3759_v41 = vld [vmem:[%s5084_s5 + $0xf8] sm:$0xff]   ;;  %v3760_v42 = vld [vmem:[%s5084_s5 + $0x100] sm:$0xff]  }
 0x1fd   : > { %v3758_v40 = vld [vmem:[%s5084_s5 + $0xf0] sm:$0xff]  }
 0x1fe   : > { %3510 = vmatprep.subr.bf16.mxu0 %v972_v45  ;;  %3648 = vmatprep.subr.bf16.mxu1 %v972_v45 }
 0x1ff   : > { %3511 = vmatpush3.bf16.msra.mxu0 %v972_v45  ;;  %3656 = vmatpush3.bf16.msra.mxu1 %v972_v45 }
 0x200   : > { %3512 = vmatprep.subr.bf16.mxu0 %v973_v43  ;;  %3649 = vmatprep.subr.bf16.mxu1 %v973_v43 }
 0x203   : > { %3513 = vmatpush3.bf16.msra.mxu0 %v973_v43  ;;  %3657 = vmatpush3.bf16.msra.mxu1 %v973_v43  ;;  %v3761_v43 = vld [vmem:[%s5084_s5 + $0x108] sm:$0xff]  }
 0x206   : > { %3515 = vmatmul.mubr.bf16.vlgmr.msra.gmra.mrb[8].mxu0 %v3700_v46  ;;  %3583 = vmatmul.mubr.bf16.vlgmr.msra.gmra.mrb[16].mxu1 %v3701_v47 }
 0x207   : > { %3518 = vmatprep.mubr.bf16.mxu0 %v3702_v48  ;;  %3586 = vmatprep.mubr.bf16.mxu1 %v3704_v49 }
 0x20e   : > { %3519 = vmatmul.mubr.bf16.gmra.mrb[12].mxu0 %v3703_v50  ;;  %3587 = vmatmul.mubr.bf16.gmra.mrb[20].mxu1 %v3705_v51 }
 0x20f   : > { %3522 = vmatprep.mubr.bf16.mxu0 %v3706_v52  ;;  %3590 = vmatprep.mubr.bf16.mxu1 %v3708_v53 }
 0x216   : > { %3523 = vmatmul.mubr.bf16.gmra.mrb[16].mxu0 %v3707_v54  ;;  %3591 = vmatmul.mubr.bf16.gmra.mrb[24].mxu1 %v3709_v55 }
 0x217   : > { %3526 = vmatprep.mubr.bf16.mxu0 %v3710_v56  ;;  %3594 = vmatprep.mubr.bf16.mxu1 %v3712_v57 }
 0x21e   : > { %3527 = vmatmul.mubr.bf16.gmra.mrb[20].mxu0 %v3711_v58  ;;  %3595 = vmatmul.mubr.bf16.gmra.mrb[28].mxu1 %v3713_v59 }
 0x21f   : > { %3530 = vmatprep.mubr.bf16.mxu0 %v3714_v60  ;;  %3598 = vmatprep.mubr.bf16.mxu1 %v3716_v61 }
 0x226   : > { %3531 = vmatmul.mubr.bf16.gmra.mrb[24].mxu0 %v3715_v62  ;;  %3599 = vmatmul.mubr.bf16.gmra.mrb[32].mxu1 %v3717_v63 }
 0x227   : > { %3534 = vmatprep.mubr.bf16.mxu0 %v3718_v0  ;;  %3602 = vmatprep.mubr.bf16.mxu1 %v3720_v1 }
 0x22e   : > { %3535 = vmatmul.mubr.bf16.gmra.mrb[28].mxu0 %v3719_v2  ;;  %3603 = vmatmul.mubr.bf16.gmra.mrb[36].mxu1 %v3721_v3 }
 0x22f   : > { %3538 = vmatprep.mubr.bf16.mxu0 %v3722_v4  ;;  %3606 = vmatprep.mubr.bf16.mxu1 %v3724_v5 }
 0x236   : > { %3539 = vmatmul.mubr.bf16.gmra.mrb[32].mxu0 %v3723_v6  ;;  %3607 = vmatmul.mubr.bf16.gmra.mrb[40].mxu1 %v3725_v7 }
 0x237   : > { %3542 = vmatprep.mubr.bf16.mxu0 %v3726_v8  ;;  %3610 = vmatprep.mubr.bf16.mxu1 %v3728_v9 }
 0x23e   : > { %3543 = vmatmul.mubr.bf16.gmra.mrb[36].mxu0 %v3727_v10  ;;  %3611 = vmatmul.mubr.bf16.gmra.mrb[44].mxu1 %v3729_v11 }
 0x23f   : > { %3546 = vmatprep.mubr.bf16.mxu0 %v3730_v12  ;;  %3614 = vmatprep.mubr.bf16.mxu1 %v3732_v13 }
 0x246   : > { %3547 = vmatmul.mubr.bf16.gmra.mrb[40].mxu0 %v3731_v14  ;;  %3615 = vmatmul.mubr.bf16.gmra.mrb[48].mxu1 %v3733_v15 }
 0x247   : > { %3550 = vmatprep.mubr.bf16.mxu0 %v3734_v16  ;;  %3618 = vmatprep.mubr.bf16.mxu1 %v3736_v17 }
 0x24e   : > { %3551 = vmatmul.mubr.bf16.gmra.mrb[44].mxu0 %v3735_v18  ;;  %3619 = vmatmul.mubr.bf16.gmra.mrb[52].mxu1 %v3737_v19 }
 0x24f   : > { %3554 = vmatprep.mubr.bf16.mxu0 %v3738_v20  ;;  %3622 = vmatprep.mubr.bf16.mxu1 %v3740_v21 }
 0x256   : > { %3555 = vmatmul.mubr.bf16.gmra.mrb[48].mxu0 %v3739_v22  ;;  %3623 = vmatmul.mubr.bf16.gmra.mrb[56].mxu1 %v3741_v23 }
 0x257   : > { %3558 = vmatprep.mubr.bf16.mxu0 %v3742_v24  ;;  %3626 = vmatprep.mubr.bf16.mxu1 %v3744_v25 }
 0x25e   : > { %3559 = vmatmul.mubr.bf16.gmra.mrb[52].mxu0 %v3743_v26  ;;  %3627 = vmatmul.mubr.bf16.gmra.mrb[60].mxu1 %v3745_v27 }
 0x25f   : > { %3562 = vmatprep.mubr.bf16.mxu0 %v3746_v28  ;;  %3630 = vmatprep.mubr.bf16.mxu1 %v3748_v29 }
 0x266   : > { %3563 = vmatmul.mubr.bf16.gmra.mrb[56].mxu0 %v3747_v30  ;;  %3631 = vmatmul.mubr.bf16.gmra.mrb[64].mxu1 %v3749_v31 }
 0x267   : > { %3566 = vmatprep.mubr.bf16.mxu0 %v3750_v32  ;;  %3634 = vmatprep.mubr.bf16.mxu1 %v3752_v33 }
 0x26e   : > { %3567 = vmatmul.mubr.bf16.gmra.mrb[60].mxu0 %v3751_v34  ;;  %3635 = vmatmul.mubr.bf16.gmra.mrb[68].mxu1 %v3753_v35 }
 0x26f   : > { %3570 = vmatprep.mubr.bf16.mxu0 %v3754_v36  ;;  %3638 = vmatprep.mubr.bf16.mxu1 %v3756_v37 }
 0x276   : > { %3571 = vmatmul.mubr.bf16.gmra.mrb[64].mxu0 %v3755_v38  ;;  %3639 = vmatmul.mubr.bf16.gmra.mrb[72].mxu1 %v3757_v39 }
 0x277   : > { %3574 = vmatprep.mubr.bf16.mxu0 %v3758_v40 }
 0x27e   : > { %3575 = vmatmul.mubr.bf16.gmra.mrb[68].mxu0 %v3759_v41 }
 0x27f   : > { %3578 = vmatprep.mubr.bf16.mxu0 %v3760_v42 }
 0x286   : > { %3579 = vmatmul.mubr.bf16.gmra.mrb[72].mxu0 %v3761_v43 }
 0x2d9   : > { %v3516_v44 = vpop.f32.mrb[8].mxu0  ;;  %v3584_v45 = vpop.f32.mrb[16].mxu1 }
 0x2da   : > { %2686 = vmax.xlane.f32.xlu1 %v3584_v45  ;;  %2550 = vmax.xlane.f32.xlu0 %v3516_v44  ;;  %v1648_v46 = vpop.f32.mrb[9].mxu0  ;;  %v1920_v47 = vpop.f32.mrb[17].mxu1 }
 0x2db   : > { %v3517_v48 = vpop.f32.mrb[10].mxu0  ;;  %v3585_v49 = vpop.f32.mrb[18].mxu1 }
 0x2dc   : > { %v1651_v50 = vpop.f32.mrb[11].mxu0  ;;  %v1923_v51 = vpop.f32.mrb[19].mxu1 }
 0x2de   : > { %2682 = vmax.xlane.f32.xlu1 %v1920_v47  ;;  %2546 = vmax.xlane.f32.xlu0 %v1648_v46 }
 0x2e1   : > { %v3520_v52 = vpop.f32.mrb[12].mxu0  ;;  %v3588_v53 = vpop.f32.mrb[20].mxu1 }
 0x2e2   : > { %2552 = vmax.xlane.f32.xlu0 %v3517_v48  ;;  %2548 = vmax.xlane.f32.xlu1 %v1651_v50  ;;  %v1664_v54 = vpop.f32.mrb[13].mxu0  ;;  %v1936_v55 = vpop.f32.mrb[21].mxu1 }
 0x2e3   : > { %v3521_v56 = vpop.f32.mrb[14].mxu0  ;;  %v3589_v57 = vpop.f32.mrb[22].mxu1 }
 0x2e4   : > { %v1667_v58 = vpop.f32.mrb[15].mxu0  ;;  %v1939_v59 = vpop.f32.mrb[23].mxu1 }
 0x2e6   : > { %2688 = vmax.xlane.f32.xlu0 %v3585_v49  ;;  %2558 = vmax.xlane.f32.xlu1 %v3520_v52 }
 0x2e9   : > { %v3524_v60 = vpop.f32.mrb[16].mxu0  ;;  %v3592_v61 = vpop.f32.mrb[24].mxu1 }
 0x2ea   : > { %2684 = vmax.xlane.f32.xlu0 %v1923_v51  ;;  %2694 = vmax.xlane.f32.xlu1 %v3588_v53  ;;  %v1680_v62 = vpop.f32.mrb[17].mxu0  ;;  %v1952_v63 = vpop.f32.mrb[25].mxu1 }
 0x2eb   : > { %v3525_v0 = vpop.f32.mrb[18].mxu0  ;;  %v3593_v1 = vpop.f32.mrb[26].mxu1 }
 0x2ec   : > { %v1683_v2 = vpop.f32.mrb[19].mxu0  ;;  %v1955_v3 = vpop.f32.mrb[27].mxu1 }
 0x2ee   : > { %2554 = vmax.xlane.f32.xlu1 %v1664_v54  ;;  %2560 = vmax.xlane.f32.xlu0 %v3521_v56 }
 0x2f1   : > { %v3528_v4 = vpop.f32.mrb[20].mxu0  ;;  %v3596_v5 = vpop.f32.mrb[28].mxu1 }
 0x2f2   : > { %2690 = vmax.xlane.f32.xlu1 %v1936_v55  ;;  %2696 = vmax.xlane.f32.xlu0 %v3589_v57  ;;  %v1696_v6 = vpop.f32.mrb[21].mxu0  ;;  %v1968_v7 = vpop.f32.mrb[29].mxu1 }
 0x2f3   : > { %v3529_v8 = vpop.f32.mrb[22].mxu0  ;;  %v3597_v9 = vpop.f32.mrb[30].mxu1 }
 0x2f4   : > { %v1699_v10 = vpop.f32.mrb[23].mxu0  ;;  %v1971_v11 = vpop.f32.mrb[31].mxu1 }
 0x2f6   : > { %2556 = vmax.xlane.f32.xlu0 %v1667_v58  ;;  %2566 = vmax.xlane.f32.xlu1 %v3524_v60 }
 0x2f9   : > { %v3532_v12 = vpop.f32.mrb[24].mxu0  ;;  %v3600_v13 = vpop.f32.mrb[32].mxu1 }
 0x2fa   : > { %2692 = vmax.xlane.f32.xlu0 %v1939_v59  ;;  %2702 = vmax.xlane.f32.xlu1 %v3592_v61  ;;  %v1712_v14 = vpop.f32.mrb[25].mxu0  ;;  %v1984_v15 = vpop.f32.mrb[33].mxu1 }
 0x2fb   : > { %v3533_v16 = vpop.f32.mrb[26].mxu0  ;;  %v3601_v17 = vpop.f32.mrb[34].mxu1 }
 0x2fc   : > { %v1715_v18 = vpop.f32.mrb[27].mxu0  ;;  %v4163_v19 = vpop.f32.mrb[35].mxu1 }
 0x2fe   : > { %2562 = vmax.xlane.f32.xlu1 %v1680_v62  ;;  %2568 = vmax.xlane.f32.xlu0 %v3525_v0 }
 0x301   : > { %v3536_v20 = vpop.f32.mrb[28].mxu0  ;;  %v3604_v21 = vpop.f32.mrb[36].mxu1 }
 0x302   : > { %2698 = vmax.xlane.f32.xlu1 %v1952_v63  ;;  %2704 = vmax.xlane.f32.xlu0 %v3593_v1  ;;  %v4165_v22 = vpop.f32.mrb[29].mxu0  ;;  %v4167_v23 = vpop.f32.mrb[37].mxu1 }
 0x303   : > { %v4169_v24 = vpop.f32.mrb[30].mxu0  ;;  %v4171_v25 = vpop.f32.mrb[38].mxu1 }
 0x304   : > { %v4173_v26 = vpop.f32.mrb[31].mxu0  ;;  %v4175_v27 = vpop.f32.mrb[39].mxu1 }
 0x306   : > { %2564 = vmax.xlane.f32.xlu0 %v1683_v2  ;;  %2574 = vmax.xlane.f32.xlu1 %v3528_v4 }
 0x309   : > { %v4177_v28 = vpop.f32.mrb[32].mxu0  ;;  %v4179_v29 = vpop.f32.mrb[40].mxu1 }
 0x30a   : > { %2700 = vmax.xlane.f32.xlu0 %v1955_v3  ;;  %2710 = vmax.xlane.f32.xlu1 %v3596_v5  ;;  %v4181_v30 = vpop.f32.mrb[33].mxu0  ;;  %v4183_v31 = vpop.f32.mrb[41].mxu1 }
 0x30b   : > { %v4185_v32 = vpop.f32.mrb[34].mxu0  ;;  %v4187_v33 = vpop.f32.mrb[42].mxu1 }
 0x30c   : > { %v4189_v34 = vpop.f32.mrb[35].mxu0  ;;  %v4191_v35 = vpop.f32.mrb[43].mxu1 }
 0x30e   : > { %2570 = vmax.xlane.f32.xlu1 %v1696_v6  ;;  %2576 = vmax.xlane.f32.xlu0 %v3529_v8 }
 0x311   : > { %v4193_v36 = vpop.f32.mrb[36].mxu0  ;;  %v4195_v37 = vpop.f32.mrb[44].mxu1 }
 0x312   : > { %2706 = vmax.xlane.f32.xlu1 %v1968_v7  ;;  %2712 = vmax.xlane.f32.xlu0 %v3597_v9  ;;  %v4197_v38 = vpop.f32.mrb[37].mxu0  ;;  %v4199_v39 = vpop.f32.mrb[45].mxu1 }
 0x313   : > { %v4201_v40 = vpop.f32.mrb[38].mxu0  ;;  %v4203_v41 = vpop.f32.mrb[46].mxu1 }
 0x314   : > { %v4205_v42 = vpop.f32.mrb[39].mxu0  ;;  %v4207_v43 = vpop.f32.mrb[47].mxu1 }
 0x316   : > { %2572 = vmax.xlane.f32.xlu0 %v1699_v10  ;;  %2582 = vmax.xlane.f32.xlu1 %v3532_v12 }
 0x319   : > { %v4209_v44 = vpop.f32.mrb[40].mxu0  ;;  %v4211_v45 = vpop.f32.mrb[48].mxu1 }
 0x31a   : > { %2708 = vmax.xlane.f32.xlu0 %v1971_v11  ;;  %2718 = vmax.xlane.f32.xlu1 %v3600_v13  ;;  %v4213_v46 = vpop.f32.mrb[41].mxu0  ;;  %v4215_v47 = vpop.f32.mrb[49].mxu1 }
 0x31b   : > { %v4217_v48 = vpop.f32.mrb[42].mxu0  ;;  %v4219_v49 = vpop.f32.mrb[50].mxu1 }
 0x31c   : > { %v4221_v50 = vpop.f32.mrb[43].mxu0  ;;  %v4223_v51 = vpop.f32.mrb[51].mxu1 }
 0x31e   : > { %2578 = vmax.xlane.f32.xlu1 %v1712_v14  ;;  %2584 = vmax.xlane.f32.xlu0 %v3533_v16 }
 0x321   : > { %v4225_v52 = vpop.f32.mrb[44].mxu0  ;;  %v4227_v53 = vpop.f32.mrb[52].mxu1 }
 0x322   : > { %2714 = vmax.xlane.f32.xlu1 %v1984_v15  ;;  %2720 = vmax.xlane.f32.xlu0 %v3601_v17  ;;  %v4229_v54 = vpop.f32.mrb[45].mxu0  ;;  %v4231_v55 = vpop.f32.mrb[53].mxu1 }
 0x323   : > { %v4233_v56 = vpop.f32.mrb[46].mxu0  ;;  %v4235_v57 = vpop.f32.mrb[54].mxu1 }
 0x324   : > { %v4237_v58 = vpop.f32.mrb[47].mxu0  ;;  %v4239_v59 = vpop.f32.mrb[55].mxu1 }
 0x326   : > { %2580 = vmax.xlane.f32.xlu0 %v1715_v18  ;;  %2590 = vmax.xlane.f32.xlu1 %v3536_v20 }
 0x329   : > { %v4241_v60 = vpop.f32.mrb[48].mxu0  ;;  %v4243_v61 = vpop.f32.mrb[56].mxu1 }
 0x32a   : > { %2716 = vmax.xlane.f32.xlu0 %v4163_v19  ;;  %2726 = vmax.xlane.f32.xlu1 %v3604_v21  ;;  %v4246_v62 = vpop.f32.mrb[49].mxu0  ;;  %v4248_v63 = vpop.f32.mrb[57].mxu1 }
 0x32b   : > { %v4250_v0 = vpop.f32.mrb[50].mxu0  ;;  %v4252_v1 = vpop.f32.mrb[58].mxu1 }
 0x32c   : > { %v4254_v2 = vpop.f32.mrb[51].mxu0  ;;  %v4256_v3 = vpop.f32.mrb[59].mxu1 }
 0x32e   : > { %2586 = vmax.xlane.f32.xlu1 %v4165_v22  ;;  %2592 = vmax.xlane.f32.xlu0 %v4169_v24 }
 0x331   : > { %v4260_v4 = vpop.f32.mrb[52].mxu0  ;;  %v4262_v5 = vpop.f32.mrb[60].mxu1 }
 0x332   : > { %2722 = vmax.xlane.f32.xlu1 %v4167_v23  ;;  %2728 = vmax.xlane.f32.xlu0 %v4171_v25  ;;  %v4266_v6 = vpop.f32.mrb[53].mxu0  ;;  %v4268_v7 = vpop.f32.mrb[61].mxu1 }
 0x333   : > { %v4270_v8 = vpop.f32.mrb[54].mxu0  ;;  %v4272_v9 = vpop.f32.mrb[62].mxu1 }
 0x334   : > { %v4274_v10 = vpop.f32.mrb[55].mxu0  ;;  %v4276_v11 = vpop.f32.mrb[63].mxu1 }
 0x336   : > { %2588 = vmax.xlane.f32.xlu0 %v4173_v26  ;;  %2598 = vmax.xlane.f32.xlu1 %v4177_v28 }
 0x339   : > { %v4280_v12 = vpop.f32.mrb[56].mxu0  ;;  %v4282_v13 = vpop.f32.mrb[64].mxu1 }
 0x33a   : > { %2724 = vmax.xlane.f32.xlu0 %v4175_v27  ;;  %2734 = vmax.xlane.f32.xlu1 %v4179_v29  ;;  %v4286_v14 = vpop.f32.mrb[57].mxu0  ;;  %v4288_v15 = vpop.f32.mrb[65].mxu1 }
 0x33b   : > { %v4290_v16 = vpop.f32.mrb[58].mxu0  ;;  %v4292_v17 = vpop.f32.mrb[66].mxu1 }
 0x33c   : > { %v4294_v18 = vpop.f32.mrb[59].mxu0  ;;  %v4296_v19 = vpop.f32.mrb[67].mxu1 }
 0x33e   : > { %2594 = vmax.xlane.f32.xlu1 %v4181_v30  ;;  %2600 = vmax.xlane.f32.xlu0 %v4185_v32 }
 0x341   : > { %v4300_v20 = vpop.f32.mrb[60].mxu0  ;;  %v4302_v21 = vpop.f32.mrb[68].mxu1 }
 0x342   : > { %2730 = vmax.xlane.f32.xlu1 %v4183_v31  ;;  %2736 = vmax.xlane.f32.xlu0 %v4187_v33  ;;  %v4306_v22 = vpop.f32.mrb[61].mxu0  ;;  %v4308_v23 = vpop.f32.mrb[69].mxu1 }
 0x343   : > { %v4310_v24 = vpop.f32.mrb[62].mxu0  ;;  %v4312_v25 = vpop.f32.mrb[70].mxu1 }
 0x344   : > { %v4314_v26 = vpop.f32.mrb[63].mxu0  ;;  %v4316_v27 = vpop.f32.mrb[71].mxu1 }
 0x345   : > { %5087 = vst [vmem:[#allocation3_spill] sm:$0xff] %v4316_v27 }
 0x346   : > { %2596 = vmax.xlane.f32.xlu0 %v4189_v34  ;;  %2606 = vmax.xlane.f32.xlu1 %v4193_v36 }
 0x349   : > { %v4320_v28 = vpop.f32.mrb[64].mxu0  ;;  %v4322_v29 = vpop.f32.mrb[72].mxu1 }
 0x34a   : > { %2732 = vmax.xlane.f32.xlu0 %v4191_v35  ;;  %2742 = vmax.xlane.f32.xlu1 %v4195_v37  ;;  %v4326_v30 = vpop.f32.mrb[65].mxu0  ;;  %v4328_v31 = vpop.f32.mrb[73].mxu1 }
 0x34b   : > { %v4330_v32 = vpop.f32.mrb[66].mxu0  ;;  %v4332_v33 = vpop.f32.mrb[74].mxu1 }
 0x34c   : > { %5088 = vst [vmem:[#allocation4_spill] sm:$0xff] %v4332_v33  ;;  %v4334_v27 = vpop.f32.mrb[67].mxu0  ;;  %v4336_v34 = vpop.f32.mrb[75].mxu1 }
 0x34e   : > { %2602 = vmax.xlane.f32.xlu1 %v4197_v38  ;;  %2608 = vmax.xlane.f32.xlu0 %v4201_v40 }
 0x351   : > { %v4340_v36 = vpop.f32.mrb[68].mxu0 }
 0x352   : > { %2738 = vmax.xlane.f32.xlu1 %v4199_v39  ;;  %2744 = vmax.xlane.f32.xlu0 %v4203_v41  ;;  %v4344_v35 = vpop.f32.mrb[69].mxu0 }
 0x353   : > { %v4346_v37 = vpop.f32.mrb[70].mxu0 }
 0x354   : > { %v4348_v33 = vpop.f32.mrb[71].mxu0 }
 0x356   : > { %2604 = vmax.xlane.f32.xlu0 %v4205_v42  ;;  %2614 = vmax.xlane.f32.xlu1 %v4209_v44  ;;  %v2872_v42 = vld [vmem:[%s5085_s6 + $0x230] sm:$0xff] }
 0x359   : > { %v4352_v38 = vpop.f32.mrb[72].mxu0 }
 0x35a   : > { %2740 = vmax.xlane.f32.xlu0 %v4207_v43  ;;  %2750 = vmax.xlane.f32.xlu1 %v4211_v45  ;;  %v4356_v39 = vpop.f32.mrb[73].mxu0  ;;  %v2804_v43 = vld [vmem:[%s5085_s6 + $0x10] sm:$0xff] }
 0x35b   : > { %v4358_v40 = vpop.f32.mrb[74].mxu0 }
 0x35c   : > { %v4360_v41 = vpop.f32.mrb[75].mxu0 }
 0x35e   : > { %2610 = vmax.xlane.f32.xlu1 %v4213_v46  ;;  %2616 = vmax.xlane.f32.xlu0 %v4217_v48  ;;  %v2870_v48 = vld [vmem:[%s5085_s6 + $0x220] sm:$0xff] }
 0x362   : > { %2746 = vmax.xlane.f32.xlu1 %v4215_v47  ;;  %2752 = vmax.xlane.f32.xlu0 %v4219_v49  ;;  %v2802_v49 = vld [vmem:[%s5085_s6] sm:$0xff] }
 0x366   : > { %2612 = vmax.xlane.f32.xlu0 %v4221_v50  ;;  %2622 = vmax.xlane.f32.xlu1 %v4225_v52 }
 0x367   : > { %v2687_v44 = vpop.xlane.xlu1 %2686  ;;  %v2551_v45 = vpop.xlane.xlu0 %2550 }
 0x368   : > { %v3000_v46 = vadd.f32 %v2872_v42, %v2687_v44  ;;  %v2932_v47 = vadd.f32 %v2804_v43, %v2551_v45  ;;  %v2805_v44 = vld [vmem:[%s5085_s6 + $0x18] sm:$0xff]  ;;  %v2803_v45 = vld [vmem:[%s5085_s6 + $0x8] sm:$0xff] }
 0x36a   : > { %3129 = vst.msk [vmem:[%s4378_s30 + $0x230] sm:$0xff] %vm3058_vm11, %v3000_v46  ;;  %3061 = vst.msk [vmem:[%s4378_s30 + $0x10] sm:$0xff] %vm3058_vm11, %v2932_v47  ;;  %2748 = vmax.xlane.f32.xlu0 %v4223_v51  ;;  %2758 = vmax.xlane.f32.xlu1 %v4227_v53 }
 0x36b   : > { %v2683_v50 = vpop.xlane.xlu1 %2682  ;;  %v2547_v52 = vpop.xlane.xlu0 %2546 }
 0x36c   : > { %v2998_v42 = vadd.f32 %v2870_v48, %v2683_v50  ;;  %v2930_v43 = vadd.f32 %v2802_v49, %v2547_v52  ;;  %v2873_v48 = vld [vmem:[%s5085_s6 + $0x238] sm:$0xff]  ;;  %v2808_v49 = vld [vmem:[%s5085_s6 + $0x30] sm:$0xff] }
 0x36e   : > { %3127 = vst.msk [vmem:[%s4378_s30 + $0x220] sm:$0xff] %vm3058_vm11, %v2998_v42  ;;  %3059 = vst.msk [vmem:[%s4378_s30] sm:$0xff] %vm3058_vm11, %v2930_v43  ;;  %2618 = vmax.xlane.f32.xlu1 %v4229_v54  ;;  %2624 = vmax.xlane.f32.xlu0 %v4233_v56  ;;  %v2871_v42 = vld [vmem:[%s5085_s6 + $0x228] sm:$0xff]  ;;  %v2876_v43 = vld [vmem:[%s5085_s6 + $0x250] sm:$0xff] }
 0x36f   : > { %v2553_v51 = vpop.xlane.xlu0 %2552  ;;  %v2549_v53 = vpop.xlane.xlu1 %2548 }
 0x370   : > { %v2933_v46 = vadd.f32 %v2805_v44, %v2553_v51  ;;  %v2931_v47 = vadd.f32 %v2803_v45, %v2549_v53  ;;  %v2806_v51 = vld [vmem:[%s5085_s6 + $0x20] sm:$0xff]  ;;  %v2809_v53 = vld [vmem:[%s5085_s6 + $0x38] sm:$0xff] }
 0x372   : > { %3062 = vst.msk [vmem:[%s4378_s30 + $0x18] sm:$0xff] %vm3058_vm11, %v2933_v46  ;;  %3060 = vst.msk [vmem:[%s4378_s30 + $0x8] sm:$0xff] %vm3058_vm11, %v2931_v47  ;;  %2754 = vmax.xlane.f32.xlu1 %v4231_v55  ;;  %2760 = vmax.xlane.f32.xlu0 %v4235_v57 }
 0x373   : > { %v2689_v54 = vpop.xlane.xlu0 %2688  ;;  %v2559_v56 = vpop.xlane.xlu1 %2558 }
 0x374   : > { %v3001_v50 = vadd.f32 %v2873_v48, %v2689_v54  ;;  %v2936_v52 = vadd.f32 %v2808_v49, %v2559_v56  ;;  %v2874_v48 = vld [vmem:[%s5085_s6 + $0x240] sm:$0xff]  ;;  %v2877_v49 = vld [vmem:[%s5085_s6 + $0x258] sm:$0xff] }
 0x376   : > { %3130 = vst.msk [vmem:[%s4378_s30 + $0x238] sm:$0xff] %vm3058_vm11, %v3001_v50  ;;  %3065 = vst.msk [vmem:[%s4378_s30 + $0x30] sm:$0xff] %vm3058_vm11, %v2936_v52  ;;  %2620 = vmax.xlane.f32.xlu0 %v4237_v58  ;;  %2630 = vmax.xlane.f32.xlu1 %v4241_v60  ;;  %v2807_v50 = vld [vmem:[%s5085_s6 + $0x28] sm:$0xff]  ;;  %v2812_v52 = vld [vmem:[%s5085_s6 + $0x50] sm:$0xff] }
 0x377   : > { %v2685_v55 = vpop.xlane.xlu0 %2684  ;;  %v2695_v57 = vpop.xlane.xlu1 %2694 }
 0x378   : > { %v2999_v44 = vadd.f32 %v2871_v42, %v2685_v55  ;;  %v3004_v45 = vadd.f32 %v2876_v43, %v2695_v57  ;;  %v2875_v55 = vld [vmem:[%s5085_s6 + $0x248] sm:$0xff]  ;;  %v2880_v57 = vld [vmem:[%s5085_s6 + $0x270] sm:$0xff] }
 0x37a   : > { %3128 = vst.msk [vmem:[%s4378_s30 + $0x228] sm:$0xff] %vm3058_vm11, %v2999_v44  ;;  %3133 = vst.msk [vmem:[%s4378_s30 + $0x250] sm:$0xff] %vm3058_vm11, %v3004_v45  ;;  %2756 = vmax.xlane.f32.xlu0 %v4239_v59  ;;  %2766 = vmax.xlane.f32.xlu1 %v4243_v61 }
 0x37b   : > { %v2555_v58 = vpop.xlane.xlu1 %2554  ;;  %v2561_v60 = vpop.xlane.xlu0 %2560 }
 0x37c   : > { %v2934_v46 = vadd.f32 %v2806_v51, %v2555_v58  ;;  %v2937_v47 = vadd.f32 %v2809_v53, %v2561_v60  ;;  %v2810_v51 = vld [vmem:[%s5085_s6 + $0x40] sm:$0xff]  ;;  %v2813_v53 = vld [vmem:[%s5085_s6 + $0x58] sm:$0xff] }
 0x37e   : > { %3063 = vst.msk [vmem:[%s4378_s30 + $0x20] sm:$0xff] %vm3058_vm11, %v2934_v46  ;;  %3066 = vst.msk [vmem:[%s4378_s30 + $0x38] sm:$0xff] %vm3058_vm11, %v2937_v47  ;;  %2626 = vmax.xlane.f32.xlu1 %v4246_v62  ;;  %2632 = vmax.xlane.f32.xlu0 %v4250_v0  ;;  %v2878_v46 = vld [vmem:[%s5085_s6 + $0x260] sm:$0xff]  ;;  %v2881_v47 = vld [vmem:[%s5085_s6 + $0x278] sm:$0xff] }
 0x37f   : > { %v2691_v59 = vpop.xlane.xlu1 %2690  ;;  %v2697_v61 = vpop.xlane.xlu0 %2696 }
 0x380   : > { %v3002_v54 = vadd.f32 %v2874_v48, %v2691_v59  ;;  %v3005_v56 = vadd.f32 %v2877_v49, %v2697_v61  ;;  %v2811_v59 = vld [vmem:[%s5085_s6 + $0x48] sm:$0xff]  ;;  %v2816_v61 = vld [vmem:[%s5085_s6 + $0x70] sm:$0xff] }
 0x382   : > { %3131 = vst.msk [vmem:[%s4378_s30 + $0x240] sm:$0xff] %vm3058_vm11, %v3002_v54  ;;  %3134 = vst.msk [vmem:[%s4378_s30 + $0x258] sm:$0xff] %vm3058_vm11, %v3005_v56  ;;  %2762 = vmax.xlane.f32.xlu1 %v4248_v63  ;;  %2768 = vmax.xlane.f32.xlu0 %v4252_v1 }
 0x383   : > { %v2557_v62 = vpop.xlane.xlu0 %2556  ;;  %v2567_v0 = vpop.xlane.xlu1 %2566 }
 0x384   : > { %v2935_v42 = vadd.f32 %v2807_v50, %v2557_v62  ;;  %v2940_v43 = vadd.f32 %v2812_v52, %v2567_v0  ;;  %v2879_v50 = vld [vmem:[%s5085_s6 + $0x268] sm:$0xff]  ;;  %v2884_v52 = vld [vmem:[%s5085_s6 + $0x290] sm:$0xff] }
 0x386   : > { %3064 = vst.msk [vmem:[%s4378_s30 + $0x28] sm:$0xff] %vm3058_vm11, %v2935_v42  ;;  %3069 = vst.msk [vmem:[%s4378_s30 + $0x50] sm:$0xff] %vm3058_vm11, %v2940_v43  ;;  %2628 = vmax.xlane.f32.xlu0 %v4254_v2  ;;  %2638 = vmax.xlane.f32.xlu1 %v4260_v4  ;;  %v2814_v42 = vld [vmem:[%s5085_s6 + $0x60] sm:$0xff]  ;;  %v2817_v43 = vld [vmem:[%s5085_s6 + $0x78] sm:$0xff] }
 0x387   : > { %v2693_v63 = vpop.xlane.xlu0 %2692  ;;  %v2703_v1 = vpop.xlane.xlu1 %2702 }
 0x388   : > { %v3003_v44 = vadd.f32 %v2875_v55, %v2693_v63  ;;  %v3008_v45 = vadd.f32 %v2880_v57, %v2703_v1  ;;  %v2882_v63 = vld [vmem:[%s5085_s6 + $0x280] sm:$0xff]  ;;  %v2885_v1 = vld [vmem:[%s5085_s6 + $0x298] sm:$0xff] }
 0x38a   : > { %3132 = vst.msk [vmem:[%s4378_s30 + $0x248] sm:$0xff] %vm3058_vm11, %v3003_v44  ;;  %3137 = vst.msk [vmem:[%s4378_s30 + $0x270] sm:$0xff] %vm3058_vm11, %v3008_v45  ;;  %2764 = vmax.xlane.f32.xlu0 %v4256_v3  ;;  %2774 = vmax.xlane.f32.xlu1 %v4262_v5 }
 0x38b   : > { %v2563_v2 = vpop.xlane.xlu1 %2562  ;;  %v2569_v4 = vpop.xlane.xlu0 %2568 }
 0x38c   : > { %v2938_v58 = vadd.f32 %v2810_v51, %v2563_v2  ;;  %v2941_v60 = vadd.f32 %v2813_v53, %v2569_v4  ;;  %v2815_v51 = vld [vmem:[%s5085_s6 + $0x68] sm:$0xff]  ;;  %v2820_v53 = vld [vmem:[%s5085_s6 + $0x90] sm:$0xff] }
 0x38e   : > { %3067 = vst.msk [vmem:[%s4378_s30 + $0x40] sm:$0xff] %vm3058_vm11, %v2938_v58  ;;  %3070 = vst.msk [vmem:[%s4378_s30 + $0x58] sm:$0xff] %vm3058_vm11, %v2941_v60  ;;  %2634 = vmax.xlane.f32.xlu1 %v4266_v6  ;;  %2640 = vmax.xlane.f32.xlu0 %v4270_v8  ;;  %v2883_v58 = vld [vmem:[%s5085_s6 + $0x288] sm:$0xff]  ;;  %v2888_v60 = vld [vmem:[%s5085_s6 + $0x2b0] sm:$0xff] }
 0x38f   : > { %v2699_v3 = vpop.xlane.xlu1 %2698  ;;  %v2705_v5 = vpop.xlane.xlu0 %2704 }
 0x390   : > { %v3006_v48 = vadd.f32 %v2878_v46, %v2699_v3  ;;  %v3009_v49 = vadd.f32 %v2881_v47, %v2705_v5  ;;  %v2818_v3 = vld [vmem:[%s5085_s6 + $0x80] sm:$0xff]  ;;  %v2821_v5 = vld [vmem:[%s5085_s6 + $0x98] sm:$0xff] }
 0x392   : > { %3135 = vst.msk [vmem:[%s4378_s30 + $0x260] sm:$0xff] %vm3058_vm11, %v3006_v48  ;;  %3138 = vst.msk [vmem:[%s4378_s30 + $0x278] sm:$0xff] %vm3058_vm11, %v3009_v49  ;;  %2770 = vmax.xlane.f32.xlu1 %v4268_v7  ;;  %2776 = vmax.xlane.f32.xlu0 %v4272_v9 }
 0x393   : > { %v2565_v6 = vpop.xlane.xlu0 %2564  ;;  %v2575_v8 = vpop.xlane.xlu1 %2574 }
 0x394   : > { %v2939_v54 = vadd.f32 %v2811_v59, %v2565_v6  ;;  %v2944_v56 = vadd.f32 %v2816_v61, %v2575_v8  ;;  %v2886_v59 = vld [vmem:[%s5085_s6 + $0x2a0] sm:$0xff]  ;;  %v2889_v61 = vld [vmem:[%s5085_s6 + $0x2b8] sm:$0xff] }
 0x396   : > { %3068 = vst.msk [vmem:[%s4378_s30 + $0x48] sm:$0xff] %vm3058_vm11, %v2939_v54  ;;  %3073 = vst.msk [vmem:[%s4378_s30 + $0x70] sm:$0xff] %vm3058_vm11, %v2944_v56  ;;  %2636 = vmax.xlane.f32.xlu0 %v4274_v10  ;;  %2646 = vmax.xlane.f32.xlu1 %v4280_v12  ;;  %v2819_v54 = vld [vmem:[%s5085_s6 + $0x88] sm:$0xff]  ;;  %v2824_v56 = vld [vmem:[%s5085_s6 + $0xb0] sm:$0xff] }
 0x397   : > { %v2701_v7 = vpop.xlane.xlu0 %2700  ;;  %v2711_v9 = vpop.xlane.xlu1 %2710 }
 0x398   : > { %v3007_v62 = vadd.f32 %v2879_v50, %v2701_v7  ;;  %v3012_v0 = vadd.f32 %v2884_v52, %v2711_v9  ;;  %v2887_v7 = vld [vmem:[%s5085_s6 + $0x2a8] sm:$0xff]  ;;  %v2892_v9 = vld [vmem:[%s5085_s6 + $0x2d0] sm:$0xff] }
 0x39a   : > { %3136 = vst.msk [vmem:[%s4378_s30 + $0x268] sm:$0xff] %vm3058_vm11, %v3007_v62  ;;  %3141 = vst.msk [vmem:[%s4378_s30 + $0x290] sm:$0xff] %vm3058_vm11, %v3012_v0  ;;  %2772 = vmax.xlane.f32.xlu0 %v4276_v11  ;;  %2782 = vmax.xlane.f32.xlu1 %v4282_v13 }
 0x39b   : > { %v2571_v10 = vpop.xlane.xlu1 %2570  ;;  %v2577_v12 = vpop.xlane.xlu0 %2576 }
 0x39c   : > { %v2942_v55 = vadd.f32 %v2814_v42, %v2571_v10  ;;  %v2945_v57 = vadd.f32 %v2817_v43, %v2577_v12  ;;  %v2822_v42 = vld [vmem:[%s5085_s6 + $0xa0] sm:$0xff]  ;;  %v2825_v43 = vld [vmem:[%s5085_s6 + $0xb8] sm:$0xff] }
 0x39e   : > { %3071 = vst.msk [vmem:[%s4378_s30 + $0x60] sm:$0xff] %vm3058_vm11, %v2942_v55  ;;  %3074 = vst.msk [vmem:[%s4378_s30 + $0x78] sm:$0xff] %vm3058_vm11, %v2945_v57  ;;  %2642 = vmax.xlane.f32.xlu1 %v4286_v14  ;;  %2648 = vmax.xlane.f32.xlu0 %v4290_v16  ;;  %v2890_v57 = vld [vmem:[%s5085_s6 + $0x2c0] sm:$0xff] }
 0x39f   : > { %v2707_v11 = vpop.xlane.xlu1 %2706  ;;  %v2713_v13 = vpop.xlane.xlu0 %2712 }
 0x3a0   : > { %v3010_v44 = vadd.f32 %v2882_v63, %v2707_v11  ;;  %v3013_v45 = vadd.f32 %v2885_v1, %v2713_v13  ;;  %v2893_v63 = vld [vmem:[%s5085_s6 + $0x2d8] sm:$0xff] }
 0x3a2   : > { %3139 = vst.msk [vmem:[%s4378_s30 + $0x280] sm:$0xff] %vm3058_vm11, %v3010_v44  ;;  %3142 = vst.msk [vmem:[%s4378_s30 + $0x298] sm:$0xff] %vm3058_vm11, %v3013_v45  ;;  %2778 = vmax.xlane.f32.xlu1 %v4288_v15  ;;  %2784 = vmax.xlane.f32.xlu0 %v4292_v17  ;;  %v2823_v44 = vld [vmem:[%s5085_s6 + $0xa8] sm:$0xff]  ;;  %v2828_v45 = vld [vmem:[%s5085_s6 + $0xd0] sm:$0xff] }
 0x3a3   : > { %v2573_v14 = vpop.xlane.xlu0 %2572  ;;  %v2583_v16 = vpop.xlane.xlu1 %2582 }
 0x3a4   : > { %v2943_v2 = vadd.f32 %v2815_v51, %v2573_v14  ;;  %v2948_v4 = vadd.f32 %v2820_v53, %v2583_v16  ;;  %v2891_v14 = vld [vmem:[%s5085_s6 + $0x2c8] sm:$0xff]  ;;  %v2896_v16 = vld [vmem:[%s5085_s6 + $0x2f0] sm:$0xff] }
 0x3a6   : > { %3072 = vst.msk [vmem:[%s4378_s30 + $0x68] sm:$0xff] %vm3058_vm11, %v2943_v2  ;;  %3077 = vst.msk [vmem:[%s4378_s30 + $0x90] sm:$0xff] %vm3058_vm11, %v2948_v4  ;;  %2644 = vmax.xlane.f32.xlu0 %v4294_v18  ;;  %2654 = vmax.xlane.f32.xlu1 %v4300_v20 }
 0x3a7   : > { %v2709_v15 = vpop.xlane.xlu0 %2708  ;;  %v2719_v17 = vpop.xlane.xlu1 %2718 }
 0x3a8   : > { %v3011_v46 = vadd.f32 %v2883_v58, %v2709_v15  ;;  %v3016_v47 = vadd.f32 %v2888_v60, %v2719_v17  ;;  %v2826_v58 = vld [vmem:[%s5085_s6 + $0xc0] sm:$0xff]  ;;  %v2829_v60 = vld [vmem:[%s5085_s6 + $0xd8] sm:$0xff] }
 0x3aa   : > { %3140 = vst.msk [vmem:[%s4378_s30 + $0x288] sm:$0xff] %vm3058_vm11, %v3011_v46  ;;  %3145 = vst.msk [vmem:[%s4378_s30 + $0x2b0] sm:$0xff] %vm3058_vm11, %v3016_v47  ;;  %2780 = vmax.xlane.f32.xlu0 %v4296_v19  ;;  %2790 = vmax.xlane.f32.xlu1 %v4302_v21  ;;  %v2894_v46 = vld [vmem:[%s5085_s6 + $0x2e0] sm:$0xff]  ;;  %v2897_v47 = vld [vmem:[%s5085_s6 + $0x2f8] sm:$0xff] }
 0x3ab   : > { %v2579_v18 = vpop.xlane.xlu1 %2578  ;;  %v2585_v20 = vpop.xlane.xlu0 %2584 }
 0x3ac   : > { %v2946_v48 = vadd.f32 %v2818_v3, %v2579_v18  ;;  %v2949_v49 = vadd.f32 %v2821_v5, %v2585_v20  ;;  %v2827_v18 = vld [vmem:[%s5085_s6 + $0xc8] sm:$0xff]  ;;  %v2832_v20 = vld [vmem:[%s5085_s6 + $0xf0] sm:$0xff] }
 0x3ae   : > { %3075 = vst.msk [vmem:[%s4378_s30 + $0x80] sm:$0xff] %vm3058_vm11, %v2946_v48  ;;  %3078 = vst.msk [vmem:[%s4378_s30 + $0x98] sm:$0xff] %vm3058_vm11, %v2949_v49  ;;  %2650 = vmax.xlane.f32.xlu1 %v4306_v22  ;;  %2656 = vmax.xlane.f32.xlu0 %v4310_v24 }
 0x3af   : > { %v2715_v19 = vpop.xlane.xlu1 %2714  ;;  %v2721_v21 = vpop.xlane.xlu0 %2720 }
 0x3b0   : > { %v3014_v6 = vadd.f32 %v2886_v59, %v2715_v19  ;;  %v3017_v8 = vadd.f32 %v2889_v61, %v2721_v21  ;;  %v2895_v59 = vld [vmem:[%s5085_s6 + $0x2e8] sm:$0xff]  ;;  %v2900_v61 = vld [vmem:[%s5085_s6 + $0x310] sm:$0xff] }
 0x3b2   : > { %3143 = vst.msk [vmem:[%s4378_s30 + $0x2a0] sm:$0xff] %vm3058_vm11, %v3014_v6  ;;  %3146 = vst.msk [vmem:[%s4378_s30 + $0x2b8] sm:$0xff] %vm3058_vm11, %v3017_v8  ;;  %2786 = vmax.xlane.f32.xlu1 %v4308_v23  ;;  %2792 = vmax.xlane.f32.xlu0 %v4312_v25  ;;  %v2830_v6 = vld [vmem:[%s5085_s6 + $0xe0] sm:$0xff]  ;;  %v2833_v8 = vld [vmem:[%s5085_s6 + $0xf8] sm:$0xff] }
 0x3b3   : > { %v2581_v22 = vpop.xlane.xlu0 %2580  ;;  %v2591_v24 = vpop.xlane.xlu1 %2590 }
 0x3b4   : > { %v2947_v50 = vadd.f32 %v2819_v54, %v2581_v22  ;;  %v2952_v52 = vadd.f32 %v2824_v56, %v2591_v24  ;;  %v5090_v54 = vld [vmem:[#allocation4_spill] sm:$0xff] }
 0x3b6   : > { %3076 = vst.msk [vmem:[%s4378_s30 + $0x88] sm:$0xff] %vm3058_vm11, %v2947_v50  ;;  %3081 = vst.msk [vmem:[%s4378_s30 + $0xb0] sm:$0xff] %vm3058_vm11, %v2952_v52  ;;  %2652 = vmax.xlane.f32.xlu0 %v4314_v26  ;;  %2662 = vmax.xlane.f32.xlu1 %v4320_v28  ;;  %v5089_v26 = vld [vmem:[#allocation3_spill] sm:$0xff]  ;;  %v2901_v52 = vld [vmem:[%s5085_s6 + $0x318] sm:$0xff] }
 0x3b7   : > { %v2717_v23 = vpop.xlane.xlu0 %2716  ;;  %v2727_v25 = vpop.xlane.xlu1 %2726  ;;  %v2898_v50 = vld [vmem:[%s5085_s6 + $0x300] sm:$0xff] }
 0x3b8   : > { %v3015_v62 = vadd.f32 %v2887_v7, %v2717_v23  ;;  %v3020_v0 = vadd.f32 %v2892_v9, %v2727_v25 }
 0x3ba   : > { %3144 = vst.msk [vmem:[%s4378_s30 + $0x2a8] sm:$0xff] %vm3058_vm11, %v3015_v62  ;;  %3149 = vst.msk [vmem:[%s4378_s30 + $0x2d0] sm:$0xff] %vm3058_vm11, %v3020_v0  ;;  %2788 = vmax.xlane.f32.xlu0 %v5089_v26  ;;  %2658 = vmax.xlane.f32.xlu1 %v4326_v30  ;;  %v2831_v62 = vld [vmem:[%s5085_s6 + $0xe8] sm:$0xff]  ;;  %v2836_v0 = vld [vmem:[%s5085_s6 + $0x110] sm:$0xff] }
 0x3bb   : > { %v2587_v28 = vpop.xlane.xlu1 %2586  ;;  %v2593_v10 = vpop.xlane.xlu0 %2592 }
 0x3bc   : > { %v2950_v12 = vadd.f32 %v2822_v42, %v2587_v28  ;;  %v2953_v55 = vadd.f32 %v2825_v43, %v2593_v10  ;;  %v2899_v10 = vld [vmem:[%s5085_s6 + $0x308] sm:$0xff] }
 0x3be   : > { %3079 = vst.msk [vmem:[%s4378_s30 + $0xa0] sm:$0xff] %vm3058_vm11, %v2950_v12  ;;  %3082 = vst.msk [vmem:[%s4378_s30 + $0xb8] sm:$0xff] %vm3058_vm11, %v2953_v55  ;;  %2794 = vmax.xlane.f32.xlu1 %v4328_v31  ;;  %2664 = vmax.xlane.f32.xlu0 %v4330_v32  ;;  %v2904_v12 = vld [vmem:[%s5085_s6 + $0x330] sm:$0xff] }
 0x3bf   : > { %v2723_v30 = vpop.xlane.xlu1 %2722  ;;  %v2729_v1 = vpop.xlane.xlu0 %2728 }
 0x3c0   : > { %v3018_v11 = vadd.f32 %v2890_v57, %v2723_v30  ;;  %v3021_v13 = vadd.f32 %v2893_v63, %v2729_v1  ;;  %v2834_v1 = vld [vmem:[%s5085_s6 + $0x100] sm:$0xff] }
 0x3c2   : > { %3147 = vst.msk [vmem:[%s4378_s30 + $0x2c0] sm:$0xff] %vm3058_vm11, %v3018_v11  ;;  %3150 = vst.msk [vmem:[%s4378_s30 + $0x2d8] sm:$0xff] %vm3058_vm11, %v3021_v13  ;;  %2660 = vmax.xlane.f32.xlu0 %v4334_v27  ;;  %2670 = vmax.xlane.f32.xlu1 %v4340_v36  ;;  %v2837_v11 = vld [vmem:[%s5085_s6 + $0x118] sm:$0xff] }
 0x3c3   : > { %v2589_v31 = vpop.xlane.xlu0 %2588  ;;  %v2599_v32 = vpop.xlane.xlu1 %2598 }
 0x3c4   : > { %v2951_v51 = vadd.f32 %v2823_v44, %v2589_v31  ;;  %v2956_v53 = vadd.f32 %v2828_v45, %v2599_v32  ;;  %v2902_v32 = vld [vmem:[%s5085_s6 + $0x320] sm:$0xff] }
 0x3c6   : > { %3080 = vst.msk [vmem:[%s4378_s30 + $0xa8] sm:$0xff] %vm3058_vm11, %v2951_v51  ;;  %3085 = vst.msk [vmem:[%s4378_s30 + $0xd0] sm:$0xff] %vm3058_vm11, %v2956_v53  ;;  %2796 = vmax.xlane.f32.xlu0 %v4336_v34  ;;  %2666 = vmax.xlane.f32.xlu1 %v4344_v35  ;;  %v2905_v51 = vld [vmem:[%s5085_s6 + $0x338] sm:$0xff] }
 0x3c7   : > { %v2725_v27 = vpop.xlane.xlu0 %2724  ;;  %v2735_v36 = vpop.xlane.xlu1 %2734 }
 0x3c8   : > { %v3019_v2 = vadd.f32 %v2891_v14, %v2725_v27  ;;  %v3024_v4 = vadd.f32 %v2896_v16, %v2735_v36  ;;  %v2835_v36 = vld [vmem:[%s5085_s6 + $0x108] sm:$0xff] }
 0x3ca   : > { %3148 = vst.msk [vmem:[%s4378_s30 + $0x2c8] sm:$0xff] %vm3058_vm11, %v3019_v2  ;;  %3153 = vst.msk [vmem:[%s4378_s30 + $0x2f0] sm:$0xff] %vm3058_vm11, %v3024_v4  ;;  %2672 = vmax.xlane.f32.xlu0 %v4346_v37  ;;  %2678 = vmax.xlane.f32.xlu1 %v4352_v38  ;;  %v2840_v2 = vld [vmem:[%s5085_s6 + $0x130] sm:$0xff] }
 0x3cb   : > { %v2595_v34 = vpop.xlane.xlu1 %2594  ;;  %v2601_v35 = vpop.xlane.xlu0 %2600 }
 0x3cc   : > { %v2954_v15 = vadd.f32 %v2826_v58, %v2595_v34  ;;  %v2957_v17 = vadd.f32 %v2829_v60, %v2601_v35  ;;  %v2903_v35 = vld [vmem:[%s5085_s6 + $0x328] sm:$0xff] }
 0x3ce   : > { %3083 = vst.msk [vmem:[%s4378_s30 + $0xc0] sm:$0xff] %vm3058_vm11, %v2954_v15  ;;  %3086 = vst.msk [vmem:[%s4378_s30 + $0xd8] sm:$0xff] %vm3058_vm11, %v2957_v17  ;;  %2668 = vmax.xlane.f32.xlu0 %v4348_v33  ;;  %2674 = vmax.xlane.f32.xlu1 %v4356_v39  ;;  %v2908_v15 = vld [vmem:[%s5085_s6 + $0x350] sm:$0xff] }
 0x3cf   : > { %v2731_v37 = vpop.xlane.xlu1 %2730  ;;  %v2737_v38 = vpop.xlane.xlu0 %2736 }
 0x3d0   : > { %v3022_v3 = vadd.f32 %v2894_v46, %v2731_v37  ;;  %v3025_v5 = vadd.f32 %v2897_v47, %v2737_v38  ;;  %v2838_v38 = vld [vmem:[%s5085_s6 + $0x120] sm:$0xff] }
 0x3d2   : > { %3151 = vst.msk [vmem:[%s4378_s30 + $0x2e0] sm:$0xff] %vm3058_vm11, %v3022_v3  ;;  %3154 = vst.msk [vmem:[%s4378_s30 + $0x2f8] sm:$0xff] %vm3058_vm11, %v3025_v5  ;;  %2798 = vmax.xlane.f32.xlu1 %v4322_v29  ;;  %2680 = vmax.xlane.f32.xlu0 %v4358_v40  ;;  %v2841_v3 = vld [vmem:[%s5085_s6 + $0x138] sm:$0xff] }
 0x3d3   : > { %v2597_v33 = vpop.xlane.xlu0 %2596  ;;  %v2607_v39 = vpop.xlane.xlu1 %2606 }
 0x3d4   : > { %v2955_v48 = vadd.f32 %v2827_v18, %v2597_v33  ;;  %v2960_v49 = vadd.f32 %v2832_v20, %v2607_v39  ;;  %v2906_v39 = vld [vmem:[%s5085_s6 + $0x340] sm:$0xff] }
 0x3d6   : > { %3084 = vst.msk [vmem:[%s4378_s30 + $0xc8] sm:$0xff] %vm3058_vm11, %v2955_v48  ;;  %3089 = vst.msk [vmem:[%s4378_s30 + $0xf0] sm:$0xff] %vm3058_vm11, %v2960_v49  ;;  %2676 = vmax.xlane.f32.xlu0 %v4360_v41  ;;  %v2909_v48 = vld [vmem:[%s5085_s6 + $0x358] sm:$0xff] }
 0x3d7   : > { %v2733_v29 = vpop.xlane.xlu0 %2732  ;;  %v2743_v40 = vpop.xlane.xlu1 %2742 }
 0x3d8   : > { %v3023_v19 = vadd.f32 %v2895_v59, %v2733_v29  ;;  %v3028_v21 = vadd.f32 %v2900_v61, %v2743_v40  ;;  %v2839_v40 = vld [vmem:[%s5085_s6 + $0x128] sm:$0xff] }
 0x3da   : > { %3152 = vst.msk [vmem:[%s4378_s30 + $0x2e8] sm:$0xff] %vm3058_vm11, %v3023_v19  ;;  %3157 = vst.msk [vmem:[%s4378_s30 + $0x310] sm:$0xff] %vm3058_vm11, %v3028_v21  ;;  %2800 = vmax.xlane.f32.xlu0 %v5090_v54  ;;  %v2844_v19 = vld [vmem:[%s5085_s6 + $0x150] sm:$0xff] }
 0x3db   : > { %v2603_v41 = vpop.xlane.xlu1 %2602  ;;  %v2609_v56 = vpop.xlane.xlu0 %2608 }
 0x3dc   : > { %v2958_v22 = vadd.f32 %v2830_v6, %v2603_v41  ;;  %v2961_v24 = vadd.f32 %v2833_v8, %v2609_v56  ;;  %v2907_v41 = vld [vmem:[%s5085_s6 + $0x348] sm:$0xff]  ;;  %v2912_v56 = vld [vmem:[%s5085_s6 + $0x370] sm:$0xff] }
 0x3de   : > { %3087 = vst.msk [vmem:[%s4378_s30 + $0xe0] sm:$0xff] %vm3058_vm11, %v2958_v22  ;;  %3090 = vst.msk [vmem:[%s4378_s30 + $0xf8] sm:$0xff] %vm3058_vm11, %v2961_v24 }
 0x3df   : > { %v2739_v7 = vpop.xlane.xlu1 %2738  ;;  %v2745_v9 = vpop.xlane.xlu0 %2744 }
 0x3e0   : > { %v3026_v23 = vadd.f32 %v2898_v50, %v2739_v7  ;;  %v3029_v25 = vadd.f32 %v2901_v52, %v2745_v9  ;;  %v2842_v7 = vld [vmem:[%s5085_s6 + $0x140] sm:$0xff]  ;;  %v2845_v9 = vld [vmem:[%s5085_s6 + $0x158] sm:$0xff] }
 0x3e2   : > { %3155 = vst.msk [vmem:[%s4378_s30 + $0x300] sm:$0xff] %vm3058_vm11, %v3026_v23  ;;  %3158 = vst.msk [vmem:[%s4378_s30 + $0x318] sm:$0xff] %vm3058_vm11, %v3029_v25 }
 0x3e3   : > { %v2605_v42 = vpop.xlane.xlu0 %2604  ;;  %v2615_v43 = vpop.xlane.xlu1 %2614 }
 0x3e4   : > { %v2959_v26 = vadd.f32 %v2831_v62, %v2605_v42  ;;  %v2964_v28 = vadd.f32 %v2836_v0, %v2615_v43  ;;  %v2910_v42 = vld [vmem:[%s5085_s6 + $0x360] sm:$0xff]  ;;  %v2913_v43 = vld [vmem:[%s5085_s6 + $0x378] sm:$0xff] }
 0x3e6   : > { %3088 = vst.msk [vmem:[%s4378_s30 + $0xe8] sm:$0xff] %vm3058_vm11, %v2959_v26  ;;  %3093 = vst.msk [vmem:[%s4378_s30 + $0x110] sm:$0xff] %vm3058_vm11, %v2964_v28 }
 0x3e7   : > { %v2741_v55 = vpop.xlane.xlu0 %2740  ;;  %v2751_v57 = vpop.xlane.xlu1 %2750 }
 0x3e8   : > { %v3027_v63 = vadd.f32 %v2899_v10, %v2741_v55  ;;  %v3032_v30 = vadd.f32 %v2904_v12, %v2751_v57  ;;  %v2843_v55 = vld [vmem:[%s5085_s6 + $0x148] sm:$0xff]  ;;  %v2848_v57 = vld [vmem:[%s5085_s6 + $0x170] sm:$0xff] }
 0x3ea   : > { %3156 = vst.msk [vmem:[%s4378_s30 + $0x308] sm:$0xff] %vm3058_vm11, %v3027_v63  ;;  %3161 = vst.msk [vmem:[%s4378_s30 + $0x330] sm:$0xff] %vm3058_vm11, %v3032_v30 }
 0x3eb   : > { %v2611_v13 = vpop.xlane.xlu1 %2610  ;;  %v2617_v44 = vpop.xlane.xlu0 %2616 }
 0x3ec   : > { %v2962_v45 = vadd.f32 %v2834_v1, %v2611_v13  ;;  %v2965_v31 = vadd.f32 %v2837_v11, %v2617_v44  ;;  %v2911_v13 = vld [vmem:[%s5085_s6 + $0x368] sm:$0xff]  ;;  %v2916_v44 = vld [vmem:[%s5085_s6 + $0x390] sm:$0xff] }
 0x3ee   : > { %3091 = vst.msk [vmem:[%s4378_s30 + $0x100] sm:$0xff] %vm3058_vm11, %v2962_v45  ;;  %3094 = vst.msk [vmem:[%s4378_s30 + $0x118] sm:$0xff] %vm3058_vm11, %v2965_v31 }
 0x3ef   : > { %v2747_v53 = vpop.xlane.xlu1 %2746  ;;  %v2753_v14 = vpop.xlane.xlu0 %2752 }
 0x3f0   : > { %v3030_v16 = vadd.f32 %v2902_v32, %v2747_v53  ;;  %v3033_v27 = vadd.f32 %v2905_v51, %v2753_v14  ;;  %v2846_v53 = vld [vmem:[%s5085_s6 + $0x160] sm:$0xff]  ;;  %v2849_v14 = vld [vmem:[%s5085_s6 + $0x178] sm:$0xff] }
 0x3f2   : > { %3159 = vst.msk [vmem:[%s4378_s30 + $0x320] sm:$0xff] %vm3058_vm11, %v3030_v16  ;;  %3162 = vst.msk [vmem:[%s4378_s30 + $0x338] sm:$0xff] %vm3058_vm11, %v3033_v27 }
 0x3f3   : > { %v2613_v4 = vpop.xlane.xlu0 %2612  ;;  %v2623_v58 = vpop.xlane.xlu1 %2622 }
 0x3f4   : > { %v2963_v60 = vadd.f32 %v2835_v36, %v2613_v4  ;;  %v2968_v34 = vadd.f32 %v2840_v2, %v2623_v58  ;;  %v2914_v4 = vld [vmem:[%s5085_s6 + $0x380] sm:$0xff]  ;;  %v2917_v58 = vld [vmem:[%s5085_s6 + $0x398] sm:$0xff] }
 0x3f6   : > { %3092 = vst.msk [vmem:[%s4378_s30 + $0x108] sm:$0xff] %vm3058_vm11, %v2963_v60  ;;  %3097 = vst.msk [vmem:[%s4378_s30 + $0x130] sm:$0xff] %vm3058_vm11, %v2968_v34 }
 0x3f7   : > { %v2749_v17 = vpop.xlane.xlu0 %2748  ;;  %v2759_v46 = vpop.xlane.xlu1 %2758 }
 0x3f8   : > { %v3031_v47 = vadd.f32 %v2903_v35, %v2749_v17  ;;  %v3036_v37 = vadd.f32 %v2908_v15, %v2759_v46  ;;  %v2847_v17 = vld [vmem:[%s5085_s6 + $0x168] sm:$0xff]  ;;  %v2852_v46 = vld [vmem:[%s5085_s6 + $0x190] sm:$0xff] }
 0x3fa   : > { %3160 = vst.msk [vmem:[%s4378_s30 + $0x328] sm:$0xff] %vm3058_vm11, %v3031_v47  ;;  %3165 = vst.msk [vmem:[%s4378_s30 + $0x350] sm:$0xff] %vm3058_vm11, %v3036_v37 }
 0x3fb   : > { %v2619_v5 = vpop.xlane.xlu1 %2618  ;;  %v2625_v18 = vpop.xlane.xlu0 %2624 }
 0x3fc   : > { %v2966_v20 = vadd.f32 %v2838_v38, %v2619_v5  ;;  %v2969_v33 = vadd.f32 %v2841_v3, %v2625_v18  ;;  %v2915_v5 = vld [vmem:[%s5085_s6 + $0x388] sm:$0xff]  ;;  %v2920_v18 = vld [vmem:[%s5085_s6 + $0x3b0] sm:$0xff] }
 0x3fe   : > { %3095 = vst.msk [vmem:[%s4378_s30 + $0x120] sm:$0xff] %vm3058_vm11, %v2966_v20  ;;  %3098 = vst.msk [vmem:[%s4378_s30 + $0x138] sm:$0xff] %vm3058_vm11, %v2969_v33 }
 0x3ff   : > { %v2755_v49 = vpop.xlane.xlu1 %2754  ;;  %v2761_v59 = vpop.xlane.xlu0 %2760 }
 0x400   : > { %v3034_v61 = vadd.f32 %v2906_v39, %v2755_v49  ;;  %v3037_v29 = vadd.f32 %v2909_v48, %v2761_v59  ;;  %v2850_v49 = vld [vmem:[%s5085_s6 + $0x180] sm:$0xff]  ;;  %v2853_v59 = vld [vmem:[%s5085_s6 + $0x198] sm:$0xff] }
 0x402   : > { %3163 = vst.msk [vmem:[%s4378_s30 + $0x340] sm:$0xff] %vm3058_vm11, %v3034_v61  ;;  %3166 = vst.msk [vmem:[%s4378_s30 + $0x358] sm:$0xff] %vm3058_vm11, %v3037_v29 }
 0x403   : > { %v2621_v21 = vpop.xlane.xlu0 %2620  ;;  %v2631_v6 = vpop.xlane.xlu1 %2630 }
 0x404   : > { %v2967_v8 = vadd.f32 %v2839_v40, %v2621_v21  ;;  %v2972_v54 = vadd.f32 %v2844_v19, %v2631_v6  ;;  %v2918_v21 = vld [vmem:[%s5085_s6 + $0x3a0] sm:$0xff]  ;;  %v2921_v6 = vld [vmem:[%s5085_s6 + $0x3b8] sm:$0xff] }
 0x406   : > { %3096 = vst.msk [vmem:[%s4378_s30 + $0x128] sm:$0xff] %vm3058_vm11, %v2967_v8  ;;  %3101 = vst.msk [vmem:[%s4378_s30 + $0x150] sm:$0xff] %vm3058_vm11, %v2972_v54 }
 0x407   : > { %v2757_v22 = vpop.xlane.xlu0 %2756  ;;  %v2767_v24 = vpop.xlane.xlu1 %2766 }
 0x408   : > { %v3035_v50 = vadd.f32 %v2907_v41, %v2757_v22  ;;  %v3040_v52 = vadd.f32 %v2912_v56, %v2767_v24  ;;  %v2851_v22 = vld [vmem:[%s5085_s6 + $0x188] sm:$0xff]  ;;  %v2856_v24 = vld [vmem:[%s5085_s6 + $0x1b0] sm:$0xff] }
 0x40a   : > { %3164 = vst.msk [vmem:[%s4378_s30 + $0x348] sm:$0xff] %vm3058_vm11, %v3035_v50  ;;  %3169 = vst.msk [vmem:[%s4378_s30 + $0x370] sm:$0xff] %vm3058_vm11, %v3040_v52 }
 0x40b   : > { %v2627_v23 = vpop.xlane.xlu1 %2626  ;;  %v2633_v25 = vpop.xlane.xlu0 %2632 }
 0x40c   : > { %v2970_v62 = vadd.f32 %v2842_v7, %v2627_v23  ;;  %v2973_v0 = vadd.f32 %v2845_v9, %v2633_v25  ;;  %v2919_v23 = vld [vmem:[%s5085_s6 + $0x3a8] sm:$0xff]  ;;  %v2924_v25 = vld [vmem:[%s5085_s6 + $0x3d0] sm:$0xff] }
 0x40e   : > { %3099 = vst.msk [vmem:[%s4378_s30 + $0x140] sm:$0xff] %vm3058_vm11, %v2970_v62  ;;  %3102 = vst.msk [vmem:[%s4378_s30 + $0x158] sm:$0xff] %vm3058_vm11, %v2973_v0 }
 0x40f   : > { %v2763_v26 = vpop.xlane.xlu1 %2762  ;;  %v2769_v28 = vpop.xlane.xlu0 %2768 }
 0x410   : > { %v3038_v10 = vadd.f32 %v2910_v42, %v2763_v26  ;;  %v3041_v12 = vadd.f32 %v2913_v43, %v2769_v28  ;;  %v2854_v26 = vld [vmem:[%s5085_s6 + $0x1a0] sm:$0xff]  ;;  %v2857_v28 = vld [vmem:[%s5085_s6 + $0x1b8] sm:$0xff] }
 0x412   : > { %3167 = vst.msk [vmem:[%s4378_s30 + $0x360] sm:$0xff] %vm3058_vm11, %v3038_v10  ;;  %3170 = vst.msk [vmem:[%s4378_s30 + $0x378] sm:$0xff] %vm3058_vm11, %v3041_v12 }
 0x413   : > { %v2629_v63 = vpop.xlane.xlu0 %2628  ;;  %v2639_v30 = vpop.xlane.xlu1 %2638 }
 0x414   : > { %v2971_v1 = vadd.f32 %v2843_v55, %v2629_v63  ;;  %v2976_v11 = vadd.f32 %v2848_v57, %v2639_v30  ;;  %v2922_v63 = vld [vmem:[%s5085_s6 + $0x3c0] sm:$0xff]  ;;  %v2925_v30 = vld [vmem:[%s5085_s6 + $0x3d8] sm:$0xff] }
 0x416   : > { %3100 = vst.msk [vmem:[%s4378_s30 + $0x148] sm:$0xff] %vm3058_vm11, %v2971_v1  ;;  %3105 = vst.msk [vmem:[%s4378_s30 + $0x170] sm:$0xff] %vm3058_vm11, %v2976_v11 }
 0x417   : > { %v2765_v45 = vpop.xlane.xlu0 %2764  ;;  %v2775_v31 = vpop.xlane.xlu1 %2774 }
 0x418   : > { %v3039_v32 = vadd.f32 %v2911_v13, %v2765_v45  ;;  %v3044_v51 = vadd.f32 %v2916_v44, %v2775_v31  ;;  %v2855_v45 = vld [vmem:[%s5085_s6 + $0x1a8] sm:$0xff]  ;;  %v2860_v31 = vld [vmem:[%s5085_s6 + $0x1d0] sm:$0xff] }
 0x41a   : > { %3168 = vst.msk [vmem:[%s4378_s30 + $0x368] sm:$0xff] %vm3058_vm11, %v3039_v32  ;;  %3173 = vst.msk [vmem:[%s4378_s30 + $0x390] sm:$0xff] %vm3058_vm11, %v3044_v51 }
 0x41b   : > { %v2635_v16 = vpop.xlane.xlu1 %2634  ;;  %v2641_v27 = vpop.xlane.xlu0 %2640 }
 0x41c   : > { %v2974_v36 = vadd.f32 %v2846_v53, %v2635_v16  ;;  %v2977_v2 = vadd.f32 %v2849_v14, %v2641_v27  ;;  %v2923_v16 = vld [vmem:[%s5085_s6 + $0x3c8] sm:$0xff]  ;;  %v2858_v27 = vld [vmem:[%s5085_s6 + $0x1c0] sm:$0xff] }
 0x41e   : > { %3103 = vst.msk [vmem:[%s4378_s30 + $0x160] sm:$0xff] %vm3058_vm11, %v2974_v36  ;;  %3106 = vst.msk [vmem:[%s4378_s30 + $0x178] sm:$0xff] %vm3058_vm11, %v2977_v2 }
 0x41f   : > { %v2771_v60 = vpop.xlane.xlu1 %2770  ;;  %v2777_v34 = vpop.xlane.xlu0 %2776 }
 0x420   : > { %v3042_v35 = vadd.f32 %v2914_v4, %v2771_v60  ;;  %v3045_v15 = vadd.f32 %v2917_v58, %v2777_v34  ;;  %v2926_v60 = vld [vmem:[%s5085_s6 + $0x3e0] sm:$0xff]  ;;  %v2861_v34 = vld [vmem:[%s5085_s6 + $0x1d8] sm:$0xff] }
 0x422   : > { %3171 = vst.msk [vmem:[%s4378_s30 + $0x380] sm:$0xff] %vm3058_vm11, %v3042_v35  ;;  %3174 = vst.msk [vmem:[%s4378_s30 + $0x398] sm:$0xff] %vm3058_vm11, %v3045_v15 }
 0x423   : > { %v2637_v47 = vpop.xlane.xlu0 %2636  ;;  %v2647_v37 = vpop.xlane.xlu1 %2646 }
 0x424   : > { %v2975_v38 = vadd.f32 %v2847_v17, %v2637_v47  ;;  %v2980_v3 = vadd.f32 %v2852_v46, %v2647_v37  ;;  %v2859_v47 = vld [vmem:[%s5085_s6 + $0x1c8] sm:$0xff]  ;;  %v2864_v37 = vld [vmem:[%s5085_s6 + $0x1f0] sm:$0xff] }
 0x426   : > { %3104 = vst.msk [vmem:[%s4378_s30 + $0x168] sm:$0xff] %vm3058_vm11, %v2975_v38  ;;  %3109 = vst.msk [vmem:[%s4378_s30 + $0x190] sm:$0xff] %vm3058_vm11, %v2980_v3 }
 0x427   : > { %v2773_v20 = vpop.xlane.xlu0 %2772  ;;  %v2783_v33 = vpop.xlane.xlu1 %2782 }
 0x428   : > { %v3043_v39 = vadd.f32 %v2915_v5, %v2773_v20  ;;  %v3048_v48 = vadd.f32 %v2920_v18, %v2783_v33  ;;  %v2927_v20 = vld [vmem:[%s5085_s6 + $0x3e8] sm:$0xff]  ;;  %v2862_v33 = vld [vmem:[%s5085_s6 + $0x1e0] sm:$0xff] }
 0x42a   : > { %3172 = vst.msk [vmem:[%s4378_s30 + $0x388] sm:$0xff] %vm3058_vm11, %v3043_v39  ;;  %3177 = vst.msk [vmem:[%s4378_s30 + $0x3b0] sm:$0xff] %vm3058_vm11, %v3048_v48 }
 0x42b   : > { %v2643_v61 = vpop.xlane.xlu1 %2642  ;;  %v2649_v29 = vpop.xlane.xlu0 %2648 }
 0x42c   : > { %v2978_v40 = vadd.f32 %v2850_v49, %v2643_v61  ;;  %v2981_v19 = vadd.f32 %v2853_v59, %v2649_v29  ;;  %v2865_v61 = vld [vmem:[%s5085_s6 + $0x1f8] sm:$0xff]  ;;  %v2868_v29 = vld [vmem:[%s5085_s6 + $0x210] sm:$0xff] }
 0x42e   : > { %3107 = vst.msk [vmem:[%s4378_s30 + $0x180] sm:$0xff] %vm3058_vm11, %v2978_v40  ;;  %3110 = vst.msk [vmem:[%s4378_s30 + $0x198] sm:$0xff] %vm3058_vm11, %v2981_v19 }
 0x42f   : > { %v2779_v8 = vpop.xlane.xlu1 %2778  ;;  %v2785_v54 = vpop.xlane.xlu0 %2784 }
 0x430   : > { %v3046_v41 = vadd.f32 %v2918_v21, %v2779_v8  ;;  %v3049_v56 = vadd.f32 %v2921_v6, %v2785_v54  ;;  %v2863_v8 = vld [vmem:[%s5085_s6 + $0x1e8] sm:$0xff]  ;;  %v2866_v54 = vld [vmem:[%s5085_s6 + $0x200] sm:$0xff] }
 0x432   : > { %3175 = vst.msk [vmem:[%s4378_s30 + $0x3a0] sm:$0xff] %vm3058_vm11, %v3046_v41  ;;  %3178 = vst.msk [vmem:[%s4378_s30 + $0x3b8] sm:$0xff] %vm3058_vm11, %v3049_v56 }
 0x433   : > { %v2645_v50 = vpop.xlane.xlu0 %2644  ;;  %v2655_v52 = vpop.xlane.xlu1 %2654 }
 0x434   : > { %v2979_v7 = vadd.f32 %v2851_v22, %v2645_v50  ;;  %v2984_v9 = vadd.f32 %v2856_v24, %v2655_v52  ;;  %v2928_v50 = vld [vmem:[%s5085_s6 + $0x3f0] sm:$0xff]  ;;  %v2869_v52 = vld [vmem:[%s5085_s6 + $0x218] sm:$0xff] }
 0x436   : > { %3108 = vst.msk [vmem:[%s4378_s30 + $0x188] sm:$0xff] %vm3058_vm11, %v2979_v7  ;;  %3113 = vst.msk [vmem:[%s4378_s30 + $0x1b0] sm:$0xff] %vm3058_vm11, %v2984_v9 }
 0x437   : > { %v2781_v62 = vpop.xlane.xlu0 %2780  ;;  %v2791_v0 = vpop.xlane.xlu1 %2790 }
 0x438   : > { %v3047_v42 = vadd.f32 %v2919_v23, %v2781_v62  ;;  %v3052_v43 = vadd.f32 %v2924_v25, %v2791_v0  ;;  %v2867_v62 = vld [vmem:[%s5085_s6 + $0x208] sm:$0xff] }
 0x43a   : > { %3176 = vst.msk [vmem:[%s4378_s30 + $0x3a8] sm:$0xff] %vm3058_vm11, %v3047_v42  ;;  %3181 = vst.msk [vmem:[%s4378_s30 + $0x3d0] sm:$0xff] %vm3058_vm11, %v3052_v43  ;;  %v2929_v43 = vld [vmem:[%s5085_s6 + $0x3f8] sm:$0xff] }
 0x43b   : > { %v2651_v10 = vpop.xlane.xlu1 %2650  ;;  %v2657_v12 = vpop.xlane.xlu0 %2656 }
 0x43c   : > { %v2982_v55 = vadd.f32 %v2854_v26, %v2651_v10  ;;  %v2985_v57 = vadd.f32 %v2857_v28, %v2657_v12 }
 0x43e   : > { %3111 = vst.msk [vmem:[%s4378_s30 + $0x1a0] sm:$0xff] %vm3058_vm11, %v2982_v55  ;;  %3114 = vst.msk [vmem:[%s4378_s30 + $0x1b8] sm:$0xff] %vm3058_vm11, %v2985_v57 }
 0x43f   : > { %v2787_v1 = vpop.xlane.xlu1 %2786  ;;  %v2793_v11 = vpop.xlane.xlu0 %2792 }
 0x440   : > { %v3050_v13 = vadd.f32 %v2922_v63, %v2787_v1  ;;  %v3053_v44 = vadd.f32 %v2925_v30, %v2793_v11 }
 0x442   : > { %3179 = vst.msk [vmem:[%s4378_s30 + $0x3c0] sm:$0xff] %vm3058_vm11, %v3050_v13  ;;  %3182 = vst.msk [vmem:[%s4378_s30 + $0x3d8] sm:$0xff] %vm3058_vm11, %v3053_v44 }
 0x443   : > { %v2653_v32 = vpop.xlane.xlu0 %2652  ;;  %v2663_v51 = vpop.xlane.xlu1 %2662 }
 0x444   : > { %v2983_v53 = vadd.f32 %v2855_v45, %v2653_v32  ;;  %v2988_v14 = vadd.f32 %v2860_v31, %v2663_v51 }
 0x446   : > { %3112 = vst.msk [vmem:[%s4378_s30 + $0x1a8] sm:$0xff] %vm3058_vm11, %v2983_v53  ;;  %3117 = vst.msk [vmem:[%s4378_s30 + $0x1d0] sm:$0xff] %vm3058_vm11, %v2988_v14 }
 0x447   : > { %v2789_v36 = vpop.xlane.xlu0 %2788  ;;  %v2659_v2 = vpop.xlane.xlu1 %2658 }
 0x448   : > { %v3051_v4 = vadd.f32 %v2923_v16, %v2789_v36  ;;  %v2986_v58 = vadd.f32 %v2858_v27, %v2659_v2 }
 0x44a   : > { %3180 = vst.msk [vmem:[%s4378_s30 + $0x3c8] sm:$0xff] %vm3058_vm11, %v3051_v4  ;;  %3115 = vst.msk [vmem:[%s4378_s30 + $0x1c0] sm:$0xff] %vm3058_vm11, %v2986_v58 }
 0x44b   : > { %v2795_v35 = vpop.xlane.xlu1 %2794  ;;  %v2665_v15 = vpop.xlane.xlu0 %2664 }
 0x44c   : > { %v3054_v17 = vadd.f32 %v2926_v60, %v2795_v35  ;;  %v2989_v46 = vadd.f32 %v2861_v34, %v2665_v15 }
 0x44e   : > { %3183 = vst.msk [vmem:[%s4378_s30 + $0x3e0] sm:$0xff] %vm3058_vm11, %v3054_v17  ;;  %3118 = vst.msk [vmem:[%s4378_s30 + $0x1d8] sm:$0xff] %vm3058_vm11, %v2989_v46 }
 0x44f   : > { %v2661_v38 = vpop.xlane.xlu0 %2660  ;;  %v2671_v3 = vpop.xlane.xlu1 %2670 }
 0x450   : > { %v2987_v5 = vadd.f32 %v2859_v47, %v2661_v38  ;;  %v2992_v18 = vadd.f32 %v2864_v37, %v2671_v3 }
 0x452   : > { %3116 = vst.msk [vmem:[%s4378_s30 + $0x1c8] sm:$0xff] %vm3058_vm11, %v2987_v5  ;;  %3121 = vst.msk [vmem:[%s4378_s30 + $0x1f0] sm:$0xff] %vm3058_vm11, %v2992_v18 }
 0x453   : > { %v2797_v39 = vpop.xlane.xlu0 %2796  ;;  %v2667_v48 = vpop.xlane.xlu1 %2666 }
 0x454   : > { %v3055_v49 = vadd.f32 %v2927_v20, %v2797_v39  ;;  %v2990_v59 = vadd.f32 %v2862_v33, %v2667_v48 }
 0x456   : > { %3184 = vst.msk [vmem:[%s4378_s30 + $0x3e8] sm:$0xff] %vm3058_vm11, %v3055_v49  ;;  %3119 = vst.msk [vmem:[%s4378_s30 + $0x1e0] sm:$0xff] %vm3058_vm11, %v2990_v59 }
 0x457   : > { %v2673_v40 = vpop.xlane.xlu0 %2672  ;;  %v2679_v19 = vpop.xlane.xlu1 %2678 }
 0x458   : > { %v2993_v21 = vadd.f32 %v2865_v61, %v2673_v40  ;;  %v2996_v6 = vadd.f32 %v2868_v29, %v2679_v19 }
 0x45a   : > { %3122 = vst.msk [vmem:[%s4378_s30 + $0x1f8] sm:$0xff] %vm3058_vm11, %v2993_v21  ;;  %3125 = vst.msk [vmem:[%s4378_s30 + $0x210] sm:$0xff] %vm3058_vm11, %v2996_v6 }
 0x45b   : > { %v2669_v41 = vpop.xlane.xlu0 %2668  ;;  %v2675_v56 = vpop.xlane.xlu1 %2674 }
 0x45c   : > { %v2991_v22 = vadd.f32 %v2863_v8, %v2669_v41  ;;  %v2994_v24 = vadd.f32 %v2866_v54, %v2675_v56 }
 0x45e   : > { %3120 = vst.msk [vmem:[%s4378_s30 + $0x1e8] sm:$0xff] %vm3058_vm11, %v2991_v22  ;;  %3123 = vst.msk [vmem:[%s4378_s30 + $0x200] sm:$0xff] %vm3058_vm11, %v2994_v24 }
 0x45f   : > { %v2799_v7 = vpop.xlane.xlu1 %2798  ;;  %v2681_v9 = vpop.xlane.xlu0 %2680 }
 0x460   : > { %v3056_v23 = vadd.f32 %v2928_v50, %v2799_v7  ;;  %v2997_v25 = vadd.f32 %v2869_v52, %v2681_v9 }
 0x462   : > { %3185 = vst.msk [vmem:[%s4378_s30 + $0x3f0] sm:$0xff] %vm3058_vm11, %v3056_v23  ;;  %3126 = vst.msk [vmem:[%s4378_s30 + $0x218] sm:$0xff] %vm3058_vm11, %v2997_v25 }
 0x463   : > { %v2677_v0 = vpop.xlane.xlu0 %2676 }
 0x464   : > { %v2995_v42 = vadd.f32 %v2867_v62, %v2677_v0 }
 0x466   : > { %3124 = vst.msk [vmem:[%s4378_s30 + $0x208] sm:$0xff] %vm3058_vm11, %v2995_v42 }
 0x467   : > { %v2801_v26 = vpop.xlane.xlu0 %2800 }
 0x468   : > { %v3057_v28 = vadd.f32 %v2929_v43, %v2801_v26 }
 0x46a   : > { %3186 = vst.msk [vmem:[%s4378_s30 + $0x3f8] sm:$0xff] %vm3058_vm11, %v3057_v28 }
 0x46b PF: > { %s17_s26 = sadd.s32 1, %s3784_s26   ;;  %s5091_s24 = smov %s3780_s25 }
 0x46c   : > { %p14_p5 = scmp.ge.s32.totalorder %s17_s26, 4   ;;  %s5092_s25 = smov %s5094_s27 }
 0x46e   :  { %16 = sbr.rel (!%p14_p5) target bundleno = 2 (0x2), region = 86 }

</bundles_post_ra>
